<compile_context>
chip_gen: v6e
topology: v6e:2x2x1
jax: 0.10.0
libtpu: 0.0.40
codegen_flags: <defaults>
</compile_context>

<pallas_src>
import math

import jax
import jax.numpy as jnp
from jax.experimental import pallas as pl
from jax.experimental.pallas import tpu as pltpu

INPUT_DIM = 768
HIDDEN_DIM = 256
OUTPUT_DIM = 4
OUT_PAD = 128          # post_net output padded to a full 128-lane register
MAX_TT = 512           # max time tile (multiple of 128); bf16 x tile stays ~6 MiB
BATCH_TILE = 8         # batch tile when B > 8 (>= 2 tiles => dual-TC sharding on v7x)


def base_model_kernel(x_ref, mask_ref, w1_ref, b1_ref, w2_ref, b2_ref,
                      out_ref, acc_ref, den_ref):
    """Grid = (batch tiles, time tiles). The time axis is a reduction: masked
    token sums are accumulated in VMEM scratch; the last time tile normalizes
    and applies post_net, writing the lane-padded output block once."""
    t = pl.program_id(1)

    @pl.when(t == 0)
    def _init():
        acc_ref[...] = jnp.zeros_like(acc_ref)
        den_ref[...] = jnp.zeros_like(den_ref)

    x = x_ref[...]                                    # (TB, TT, D) bf16 (cast in wrapper)
    keep = 1.0 - mask_ref[...]                        # (TB, TT) f32, 1 = valid token

    # pre_net on the MXU: bf16 operands (x streamed as bf16, W1 stored as bf16),
    # f32 accumulation.  Batched einsum avoids any reshape that could materialize
    # a VMEM copy of the ~6 MiB activation tile.
    h = jnp.einsum('btd,dh->bth', x, w1_ref[...],
                   preferred_element_type=jnp.float32) + b1_ref[...]

    # Exact erf-based GELU (PyTorch nn.GELU() default, approximate='none').
    h = 0.5 * h * (1.0 + jax.lax.erf(h * (1.0 / math.sqrt(2.0))))

    # Masked partial sums for the mean pool, accumulated across time tiles.
    acc_ref[...] += jnp.sum(h * keep[:, :, None], axis=1)            # (TB, H)
    den_ref[...] += jnp.sum(keep, axis=1, keepdims=True)             # (TB, 1)

    @pl.when(t == pl.num_programs(1) - 1)
    def _finalize():
        # Token counts are integer-valued, so max(denom, 1) leaves every row with
        # at least one valid token untouched; it only guards fully-padded rows
        # (including wrapper-added batch-padding rows, which are sliced off).
        denom = jnp.maximum(den_ref[...], 1.0)
        pooled = acc_ref[...] * pl.reciprocal(denom, approx=False)   # (TB, H)
        out = jnp.dot(pooled, w2_ref[...],
                      preferred_element_type=jnp.float32) + b2_ref[...]
        out_ref[...] = out.astype(out_ref.dtype)                     # lane-dense store


def _round_up(n, m):
    return ((n + m - 1) // m) * m


def prepare_params(w1, b1, w2, b2):
    """One-time parameter prep (model-load time, not per call):
       W1 -> bf16, biases -> (1, N) rows, W2/b2 zero-padded to 128 output lanes."""
    w1_bf16 = jnp.asarray(w1, jnp.bfloat16)
    b1_row = jnp.asarray(b1, jnp.float32).reshape(1, HIDDEN_DIM)
    w2_pad = jnp.zeros((HIDDEN_DIM, OUT_PAD), jnp.float32).at[:, :OUTPUT_DIM].set(w2)
    b2_pad = jnp.zeros((1, OUT_PAD), jnp.float32).at[0, :OUTPUT_DIM].set(b2)
    return w1_bf16, b1_row, w2_pad, b2_pad


def base_model_forward(x, padding_mask, w1_bf16, b1_row, w2_pad, b2_pad):
    """x: (B, T, D), padding_mask: (B, T) (1 = padded). Returns (B, OUTPUT_DIM)."""
    B, T, D = x.shape
    assert D == INPUT_DIM, (D, INPUT_DIM)

    # --- time tiling: pad T to a multiple of 128 and tile at <= MAX_TT ----------
    t128 = max(128, _round_up(T, 128))
    if t128 <= MAX_TT:
        tt, T_pad = t128, t128
    else:
        tt = MAX_TT
        T_pad = _round_up(T, tt)

    # --- batch tiling: >= 2 tiles for large B so v7x's two TCs both get work ----
    if B <= BATCH_TILE:
        tb, B_pad = B, B                 # block == full dim satisfies the (8,128) rule
    else:
        tb = BATCH_TILE
        B_pad = _round_up(B, BATCH_TILE)

    # --- wrapper-side prep: cast x to bf16 once; pad with fully-masked tokens ---
    x_bf16 = x.astype(jnp.bfloat16)
    mask_f32 = padding_mask.astype(jnp.float32)
    if (B_pad, T_pad) != (B, T):
        x_bf16 = jnp.pad(x_bf16, ((0, B_pad - B), (0, T_pad - T), (0, 0)))
        mask_f32 = jnp.pad(mask_f32, ((0, B_pad - B), (0, T_pad - T)),
                           constant_values=1.0)     # pad tokens are "padded"

    grid = (B_pad // tb, T_pad // tt)

    # Worst-case VMEM (tb=8, tt=512): bf16 x tile ~6 MiB x 2 buffers + mask tiles
    # + <0.6 MiB resident weights ~= 13 MiB -> fits the 32 MiB scoped default and
    # v7x's 64 MiB physical VMEM with plenty of headroom.
    out_padded = pl.pallas_call(
        base_model_kernel,
        out_shape=jax.ShapeDtypeStruct((B_pad, OUT_PAD), jnp.float32),
        grid_spec=pltpu.PrefetchScalarGridSpec(
            num_scalar_prefetch=0,
            grid=grid,
            in_specs=[
                pl.BlockSpec((tb, tt, D), lambda b, t: (b, t, 0)),         # x (bf16) streams
                pl.BlockSpec((tb, tt), lambda b, t: (b, t)),               # padding_mask (f32)
                pl.BlockSpec((D, HIDDEN_DIM), lambda b, t: (0, 0)),        # W1 resident (bf16)
                pl.BlockSpec((1, HIDDEN_DIM), lambda b, t: (0, 0)),        # b1
                pl.BlockSpec((HIDDEN_DIM, OUT_PAD), lambda b, t: (0, 0)),  # W2 (lane-padded)
                pl.BlockSpec((1, OUT_PAD), lambda b, t: (0, 0)),           # b2 (lane-padded)
            ],
            out_specs=pl.BlockSpec((tb, OUT_PAD), lambda b, t: (b, 0)),
            scratch_shapes=[
                pltpu.VMEM((tb, HIDDEN_DIM), jnp.float32),   # pooled numerator accumulator
                pltpu.VMEM((tb, 1), jnp.float32),            # valid-token count accumulator
            ],
        ),
        compiler_params=pltpu.CompilerParams(
            # batch tiles shard across v7x's two TensorCores; time axis is a reduction
            dimension_semantics=("parallel", "arbitrary")),
    )(x_bf16, mask_f32, w1_bf16, b1_row, w2_pad, b2_pad)

    # Strip batch padding and the lane padding back to the real output width.
    return out_padded[:B, :OUTPUT_DIM]


def reference_forward(x, padding_mask, w1, b1, w2, b2, *, cast_x_to_bf16=False):
    """Pure-JAX mirror of the PyTorch module (optionally using the kernel's
    bf16-rounded pre_net operands for a tight numerical comparison)."""
    xr = x.astype(jnp.bfloat16).astype(jnp.float32) if cast_x_to_bf16 else x
    h = jnp.dot(xr, w1, preferred_element_type=jnp.float32,
                precision=jax.lax.Precision.HIGHEST) + b1
    h = 0.5 * h * (1.0 + jax.lax.erf(h / jnp.sqrt(2.0)))
    keep = 1.0 - padding_mask.astype(jnp.float32)
    h = h * keep[:, :, None]
    pooled = h.sum(axis=1) / keep.sum(axis=1, keepdims=True)
    return jnp.dot(pooled, w2, precision=jax.lax.Precision.HIGHEST) + b2


if __name__ == "__main__":
    key = jax.random.PRNGKey(0)
    k_x, k_m, k_w1, k_b1, k_w2, k_b2 = jax.random.split(key, 6)

    B, T = 2, 8
    x = jax.random.normal(k_x, (B, T, INPUT_DIM), dtype=jnp.float32)

    # padding_mask: 1 = padded, 0 = valid. Guarantee at least one valid token/row.
    padding_mask = (jax.random.uniform(k_m, (B, T)) > 0.6).astype(jnp.float32)
    padding_mask = padding_mask.at[:, 0].set(0.0)

    # Parameters stored as (in, out) so the kernel computes x @ W + b.
    w1 = jax.random.normal(k_w1, (INPUT_DIM, HIDDEN_DIM), dtype=jnp.float32) * 0.02
    b1 = jax.random.normal(k_b1, (HIDDEN_DIM,), dtype=jnp.float32) * 0.02
    w2 = jax.random.normal(k_w2, (HIDDEN_DIM, OUTPUT_DIM), dtype=jnp.float32) * 0.02
    b2 = jax.random.normal(k_b2, (OUTPUT_DIM,), dtype=jnp.float32) * 0.02

    params = prepare_params(w1, b1, w2, b2)

    out = base_model_forward(x, padding_mask, *params)
    out = jax.block_until_ready(out)
    assert out.shape == (B, OUTPUT_DIM), out.shape

    # Tight check vs. a reference using the same bf16-rounded pre_net operands
    # (bf16 products are exact in f32, so only accumulation order differs).
    ref_bf16 = reference_forward(x, padding_mask, params[0].astype(jnp.float32),
                                 b1, w2, b2, cast_x_to_bf16=True)
    assert jnp.allclose(out, ref_bf16, atol=2e-4, rtol=2e-4), (out, ref_bf16)

    # Loose sanity check vs. the full-f32 PyTorch-equivalent reference
    # (bf16 W1/x rounding keeps the output well within this tolerance).
    ref_f32 = reference_forward(x, padding_mask, w1, b1, w2, b2)
    assert jnp.allclose(out, ref_f32, atol=1e-2, rtol=1e-2), (out, ref_f32)

    print("KERNEL_OK")
</pallas_src>

<mosaic_0001>
module attributes {stable_mosaic.version = 11 : i64} {
  func.func @base_model_kernel(%arg0: i32, %arg1: i32, %arg2: memref<2x128x768xbf16, #tpu.memory_space<vmem>>, %arg3: memref<2x128xf32, #tpu.memory_space<vmem>>, %arg4: memref<768x256xbf16, #tpu.memory_space<vmem>>, %arg5: memref<1x256xf32, #tpu.memory_space<vmem>>, %arg6: memref<256x128xf32, #tpu.memory_space<vmem>>, %arg7: memref<1x128xf32, #tpu.memory_space<vmem>>, %arg8: memref<2x128xf32, #tpu.memory_space<vmem>>, %arg9: memref<2x256xf32, #tpu.memory_space<vmem>>, %arg10: memref<2x1xf32, #tpu.memory_space<vmem>>) attributes {dimension_semantics = [#tpu.dimension_semantics<parallel>, #tpu.dimension_semantics<arbitrary>], iteration_bounds = array<i64: 1, 1>, scalar_prefetch = 0 : i64, scratch_operands = 2 : i64, tpu.core_type = #tpu.core_type<tc>, window_params = [{transform_indices = @transform_0, window_bounds = array<i64: 2, 128, 768>}, {transform_indices = @transform_1, window_bounds = array<i64: 2, 128>}, {pipeline_mode = #tpu.pipeline_mode<synchronous>, transform_indices = @transform_2, window_bounds = array<i64: 768, 256>}, {pipeline_mode = #tpu.pipeline_mode<synchronous>, transform_indices = @transform_3, window_bounds = array<i64: 1, 256>}, {pipeline_mode = #tpu.pipeline_mode<synchronous>, transform_indices = @transform_4, window_bounds = array<i64: 256, 128>}, {pipeline_mode = #tpu.pipeline_mode<synchronous>, transform_indices = @transform_5, window_bounds = array<i64: 1, 128>}, {transform_indices = @transform_6, window_bounds = array<i64: 2, 128>}]} {
    %c0_i32 = arith.constant 0 : i32
    %0 = arith.cmpi eq, %arg1, %c0_i32 : i32
    %1 = arith.extui %0 : i1 to i32
    %c0_i32_0 = arith.constant 0 : i32
    %2 = arith.cmpi ne, %1, %c0_i32_0 : i32
    scf.if %2 {
      %cst_25 = arith.constant 0.000000e+00 : f32
      %36 = vector.broadcast %cst_25 : f32 to vector<2x256xf32>
      %c0_26 = arith.constant 0 : index
      %c0_27 = arith.constant 0 : index
      %37 = vector.load %arg9[%c0_26, %c0_27] : memref<2x256xf32, #tpu.memory_space<vmem>>, vector<2x256xf32>
      tpu.vector_store %arg9[%c0_26, %c0_27], %36 {strides = array<i32>} : memref<2x256xf32, #tpu.memory_space<vmem>>, vector<2x256xf32>,
      %cst_28 = arith.constant 0.000000e+00 : f32
      %38 = vector.broadcast %cst_28 : f32 to vector<2x1xf32>
      %c0_29 = arith.constant 0 : index
      %c0_30 = arith.constant 0 : index
      %39 = vector.load %arg10[%c0_29, %c0_30] : memref<2x1xf32, #tpu.memory_space<vmem>>, vector<2x1xf32>
      tpu.vector_store %arg10[%c0_29, %c0_30], %38 {strides = array<i32>} : memref<2x1xf32, #tpu.memory_space<vmem>>, vector<2x1xf32>,
    } else {
    }
    %c0 = arith.constant 0 : index
    %c0_1 = arith.constant 0 : index
    %c0_2 = arith.constant 0 : index
    %3 = vector.load %arg2[%c0, %c0_1, %c0_2] : memref<2x128x768xbf16, #tpu.memory_space<vmem>>, vector<2x128x768xbf16>
    %c0_3 = arith.constant 0 : index
    %c0_4 = arith.constant 0 : index
    %4 = vector.load %arg3[%c0_3, %c0_4] : memref<2x128xf32, #tpu.memory_space<vmem>>, vector<2x128xf32>
    %cst = arith.constant 1.000000e+00 : f32
    %5 = vector.broadcast %cst : f32 to vector<2x128xf32>
    %6 = arith.subf %5, %4 : vector<2x128xf32>
    %c0_5 = arith.constant 0 : index
    %c0_6 = arith.constant 0 : index
    %7 = vector.load %arg4[%c0_5, %c0_6] : memref<768x256xbf16, #tpu.memory_space<vmem>>, vector<768x256xbf16>
    "tpu.trace_start"() <{level = 10 : i32, message = "btd,dh->bth"}> : () -> ()
    %cst_7 = arith.constant dense<0.000000e+00> : vector<2x128x256xf32>
    %8 = tpu.matmul %3, %7, %cst_7 {dimension_numbers = #tpu.dot_dimension_numbers<[2], [0], [0, 1], [1], [0, 0, 0, 1, 1, 1], [], []>} : vector<2x128x768xbf16>, vector<768x256xbf16>, vector<2x128x256xf32> -> vector<2x128x256xf32>
    "tpu.trace_stop"() : () -> ()
    %c0_8 = arith.constant 0 : index
    %c0_9 = arith.constant 0 : index
    %9 = vector.load %arg5[%c0_8, %c0_9] : memref<1x256xf32, #tpu.memory_space<vmem>>, vector<1x256xf32>
    %10 = vector.shape_cast %9 : vector<1x256xf32> to vector<1x1x256xf32>
    %11 = vector.broadcast %10 : vector<1x1x256xf32> to vector<2x128x256xf32>
    %12 = arith.addf %8, %11 : vector<2x128x256xf32>
    %cst_10 = arith.constant 5.000000e-01 : f32
    %13 = vector.broadcast %cst_10 : f32 to vector<2x128x256xf32>
    %14 = arith.mulf %13, %12 : vector<2x128x256xf32>
    %cst_11 = arith.constant 0.707106769 : f32
    %15 = vector.broadcast %cst_11 : f32 to vector<2x128x256xf32>
    %16 = arith.mulf %12, %15 : vector<2x128x256xf32>
    %17 = math.erf %16 : vector<2x128x256xf32>
    %cst_12 = arith.constant 1.000000e+00 : f32
    %18 = vector.broadcast %cst_12 : f32 to vector<2x128x256xf32>
    %19 = arith.addf %18, %17 : vector<2x128x256xf32>
    %20 = arith.mulf %14, %19 : vector<2x128x256xf32>
    %c0_13 = arith.constant 0 : index
    %c0_14 = arith.constant 0 : index
    %21 = vector.load %arg9[%c0_13, %c0_14] : memref<2x256xf32, #tpu.memory_space<vmem>>, vector<2x256xf32>
    %22 = vector.shape_cast %6 : vector<2x128xf32> to vector<2x128x1xf32>
    %23 = vector.broadcast %22 : vector<2x128x1xf32> to vector<2x128x256xf32>
    %24 = arith.mulf %20, %23 : vector<2x128x256xf32>
    %cst_15 = arith.constant dense<0.000000e+00> : vector<2x256xf32>
    %25 = vector.multi_reduction <add>, %24, %cst_15 [1] : vector<2x128x256xf32> to vector<2x256xf32>
    %26 = arith.addf %21, %25 : vector<2x256xf32>
    %c0_16 = arith.constant 0 : index
    %c0_17 = arith.constant 0 : index
    %27 = vector.load %arg9[%c0_16, %c0_17] : memref<2x256xf32, #tpu.memory_space<vmem>>, vector<2x256xf32>
    tpu.vector_store %arg9[%c0_16, %c0_17], %26 {strides = array<i32>} : memref<2x256xf32, #tpu.memory_space<vmem>>, vector<2x256xf32>,
    %c0_18 = arith.constant 0 : index
    %c0_19 = arith.constant 0 : index
    %28 = vector.load %arg10[%c0_18, %c0_19] : memref<2x1xf32, #tpu.memory_space<vmem>>, vector<2x1xf32>
    %cst_20 = arith.constant dense<0.000000e+00> : vector<2xf32>
    %29 = vector.multi_reduction <add>, %6, %cst_20 [1] : vector<2x128xf32> to vector<2xf32>
    %30 = vector.shape_cast %29 : vector<2xf32> to vector<2x1xf32>
    %31 = arith.addf %28, %30 : vector<2x1xf32>
    %c0_21 = arith.constant 0 : index
    %c0_22 = arith.constant 0 : index
    %32 = vector.load %arg10[%c0_21, %c0_22] : memref<2x1xf32, #tpu.memory_space<vmem>>, vector<2x1xf32>
    tpu.vector_store %arg10[%c0_21, %c0_22], %31 {strides = array<i32>} : memref<2x1xf32, #tpu.memory_space<vmem>>, vector<2x1xf32>,
    %c0_i32_23 = arith.constant 0 : i32
    %33 = arith.cmpi eq, %arg1, %c0_i32_23 : i32
    %34 = arith.extui %33 : i1 to i32
    %c0_i32_24 = arith.constant 0 : i32
    %35 = arith.cmpi ne, %34, %c0_i32_24 : i32
    scf.if %35 {
      %c0_25 = arith.constant 0 : index
      %c0_26 = arith.constant 0 : index
      %36 = vector.load %arg10[%c0_25, %c0_26] : memref<2x1xf32, #tpu.memory_space<vmem>>, vector<2x1xf32>
      %cst_27 = arith.constant 1.000000e+00 : f32
      %37 = vector.broadcast %cst_27 : f32 to vector<2x1xf32>
      %38 = arith.maximumf %36, %37 : vector<2x1xf32>
      %c0_28 = arith.constant 0 : index
      %c0_29 = arith.constant 0 : index
      %39 = vector.load %arg9[%c0_28, %c0_29] : memref<2x256xf32, #tpu.memory_space<vmem>>, vector<2x256xf32>
      %40 = tpu.reciprocal %38 : vector<2x1xf32> -> vector<2x1xf32>
      %41 = vector.broadcast %40 : vector<2x1xf32> to vector<2x256xf32>
      %42 = arith.mulf %39, %41 : vector<2x256xf32>
      %c0_30 = arith.constant 0 : index
      %c0_31 = arith.constant 0 : index
      %43 = vector.load %arg6[%c0_30, %c0_31] : memref<256x128xf32, #tpu.memory_space<vmem>>, vector<256x128xf32>
      %cst_32 = arith.constant dense<0.000000e+00> : vector<2x128xf32>
      %44 = tpu.matmul %42, %43, %cst_32 {dimension_numbers = #tpu.dot_dimension_numbers<[1], [0], [0], [1], [0, 0, 1, 1], [], []>} : vector<2x256xf32>, vector<256x128xf32>, vector<2x128xf32> -> vector<2x128xf32>
      %c0_33 = arith.constant 0 : index
      %c0_34 = arith.constant 0 : index
      %45 = vector.load %arg7[%c0_33, %c0_34] : memref<1x128xf32, #tpu.memory_space<vmem>>, vector<1x128xf32>
      %46 = vector.broadcast %45 : vector<1x128xf32> to vector<2x128xf32>
      %47 = arith.addf %44, %46 : vector<2x128xf32>
      %c0_35 = arith.constant 0 : index
      %c0_36 = arith.constant 0 : index
      %48 = vector.load %arg8[%c0_35, %c0_36] : memref<2x128xf32, #tpu.memory_space<vmem>>, vector<2x128xf32>
      tpu.vector_store %arg8[%c0_35, %c0_36], %47 {strides = array<i32>} : memref<2x128xf32, #tpu.memory_space<vmem>>, vector<2x128xf32>,
    } else {
    }
    return
  }
  func.func @transform_0(%arg0: i32, %arg1: i32) -> (i32, i32, i32) {
    %c0_i32 = arith.constant 0 : i32
    %c0_i32_0 = arith.constant 0 : i32
    return %arg0, %arg1, %c0_i32 : i32, i32, i32
  }
  func.func @transform_1(%arg0: i32, %arg1: i32) -> (i32, i32) {
    %c0_i32 = arith.constant 0 : i32
    return %arg0, %arg1 : i32, i32
  }
  func.func @transform_2(%arg0: i32, %arg1: i32) -> (i32, i32) {
    %c0_i32 = arith.constant 0 : i32
    %c0_i32_0 = arith.constant 0 : i32
    %c0_i32_1 = arith.constant 0 : i32
    return %c0_i32, %c0_i32_0 : i32, i32
  }
  func.func @transform_3(%arg0: i32, %arg1: i32) -> (i32, i32) {
    %c0_i32 = arith.constant 0 : i32
    %c0_i32_0 = arith.constant 0 : i32
    %c0_i32_1 = arith.constant 0 : i32
    return %c0_i32, %c0_i32_0 : i32, i32
  }
  func.func @transform_4(%arg0: i32, %arg1: i32) -> (i32, i32) {
    %c0_i32 = arith.constant 0 : i32
    %c0_i32_0 = arith.constant 0 : i32
    %c0_i32_1 = arith.constant 0 : i32
    return %c0_i32, %c0_i32_0 : i32, i32
  }
  func.func @transform_5(%arg0: i32, %arg1: i32) -> (i32, i32) {
    %c0_i32 = arith.constant 0 : i32
    %c0_i32_0 = arith.constant 0 : i32
    %c0_i32_1 = arith.constant 0 : i32
    return %c0_i32, %c0_i32_0 : i32, i32
  }
  func.func @transform_6(%arg0: i32, %arg1: i32) -> (i32, i32) {
    %c0_i32 = arith.constant 0 : i32
    %c0_i32_0 = arith.constant 0 : i32
    return %arg0, %c0_i32 : i32, i32
  }
}

</mosaic_0001>

<bundles_post_ra>
// kernel: tpu_custom_call.1
= control target key start
LH: loop header
LB: loop body
LE: loop exit
PB: predicated region body
PF: predicated region fallthrough
CT: control target
= control target key end

     0   :  { %11 = vsyncpa [#allocation5], 0  ;;  %s4230_s0 = inlined_call_operand.hbm [shape: bf16[2,128,768], index: 0, kind: input, shape index: {}]   ;;  %s4231_s1 = inlined_call_operand.hbm [shape: f32[2,128], index: 1, kind: input, shape index: {}]   ;;  %s4232_s2 = inlined_call_operand.hbm [shape: bf16[768,256], index: 2, kind: input, shape index: {}]   ;;  %s4233_s3 = inlined_call_operand.vmem [shape: f32[1,256], index: 3, kind: input, shape index: {}]   ;;  %s4234_s4 = inlined_call_operand.hbm [shape: f32[256,128], index: 4, kind: input, shape index: {}]   ;;  %s4235_s5 = inlined_call_operand.vmem [shape: f32[1,128], index: 5, kind: input, shape index: {}]   ;;  %s4236_s6 = inlined_call_operand.hbm [shape: f32[2,128], index: 6, kind: output, shape index: {}]  }
   0x1   :  { %12 = vsyncpa [#allocation8], 0 }
   0x2   :  { %13 = vsyncpa [#allocation11], 0 }
   0x3   :  { %14 = vsyncpa [#allocation6], 0  ;;  %s3434_s21 = smov [#allocation7]   ;;  %s3435_s23 = smov [#allocation4]  }
   0x4   :  { %s33_s22 = sshll.u32 %s3434_s21, 4  ;;  %s20_s24 = sshll.u32 %s3435_s23, 4  ;;  %s34_s22 = int_to_ptr.vmem [resolvable:$true] %s33_s22  ;;  %s21_s24 = int_to_ptr.vmem [resolvable:$true] %s20_s24 }
   0x5   :  { %s3334_s25 = scalar_lea.vmem %s34_s22, 32  ;;  %p3339_p1 = scmp.lt.s32.totalorder %s34_s22, %s34_s22 }
   0x6   :  { %p3335_p0 = scmp.ne.s32.totalorder %s34_s22, %s3334_s25  ;;  %p3340_p2 = scmp.lt.s32.totalorder %s3334_s25, %s3334_s25 }
   0x8   :  { %p3341_p3 = por %p3340_p2, %p3339_p1 }
   0xa   :  { %p3342_p4 = pnand %p3341_p3, %p3335_p0 }
   0xc   :  { %3345 = shalt.err (!%p3342_p4)
}
   0xd   :  { %36 = dma.hbm_to_vmem [thread:$0]  %s4231_s1, 32, %s34_s22, [#allocation8]  }
   0xe   :  { %s3354_s28 = scalar_lea.vmem %s21_s24, 12288  ;;  %p3359_p6 = scmp.lt.s32.totalorder %s21_s24, %s21_s24 }
   0xf   :  { %p3355_p5 = scmp.ne.s32.totalorder %s21_s24, %s3354_s28  ;;  %p3360_p7 = scmp.lt.s32.totalorder %s3354_s28, %s3354_s28 }
  0x11   :  { %p3361_p8 = por %p3360_p7, %p3359_p6 }
  0x13   :  { %p3362_p9 = pnand %p3361_p8, %p3355_p5 }
  0x15   :  { %3365 = shalt.err (!%p3362_p9)
}
  0x16   :  { %s3436_s29 = smov 384   ;;  %s3437_s30 = smov 24  }
  0x17   :  { %26 = dma.hbm_to_vmem [thread:$0]  %s4230_s0, 12288, %s21_s24, [#allocation5], %s3436_s29, %s3436_s29, %s3437_s30  }
  0x18   :  { %s3438_s9 = smov [#allocation9]  }
  0x19   :  { %s42_s10 = sshll.u32 %s3438_s9, 4  ;;  %s43_s10 = int_to_ptr.vmem [resolvable:$true] %s42_s10 }
  0x1a   :  { %s3374_s11 = scalar_lea.vmem %s43_s10, 12288  ;;  %p3379_p11 = scmp.lt.s32.totalorder %s43_s10, %s43_s10 }
  0x1b   :  { %p3375_p10 = scmp.ne.s32.totalorder %s43_s10, %s3374_s11  ;;  %p3380_p12 = scmp.lt.s32.totalorder %s3374_s11, %s3374_s11 }
  0x1d   :  { %p3381_p13 = por %p3380_p12, %p3379_p11 }
  0x1f   :  { %p3382_p0 = pnand %p3381_p13, %p3375_p10 }
  0x21   :  { %3385 = shalt.err (!%p3382_p0)
}
  0x22   :  { %s3439_s1 = smov 128   ;;  %s3440_s12 = smov 8  }
  0x23   :  { %48 = dma.hbm_to_vmem [thread:$0]  %s4232_s2, 12288, %s43_s10, [#allocation8], %s3439_s1, %s3439_s1, %s3440_s12  }
  0x24   :  { %s3441_s15 = smov [#allocation10]  }
  0x25   :  { %s56_s16 = sshll.u32 %s3441_s15, 4  ;;  %s57_s16 = int_to_ptr.vmem [resolvable:$true] %s56_s16 }
  0x26   :  { %s3394_s0 = scalar_lea.vmem %s57_s16, 4096  ;;  %p3399_p2 = scmp.lt.s32.totalorder %s57_s16, %s57_s16 }
  0x27   :  { %p3395_p1 = scmp.ne.s32.totalorder %s57_s16, %s3394_s0  ;;  %p3400_p3 = scmp.lt.s32.totalorder %s3394_s0, %s3394_s0 }
  0x29   :  { %p3401_p4 = por %p3400_p3, %p3399_p2 }
  0x2b   :  { %p3402_p5 = pnand %p3401_p4, %p3395_p1 }
  0x2d   :  { %3405 = shalt.err (!%p3402_p5)
}
  0x2e   :  { %62 = dma.hbm_to_vmem [thread:$0]  %s4234_s4, 4096, %s57_s16, [#allocation11], %s3439_s1, %s3439_s1, %s3440_s12  }
  0x2f   :  { %3426 = dma.done.wait [#allocation5], 12288  }
  0x30   :  { %3427 = vsyncadd [#allocation5], 4294955008 }
  0x31   :  { %3428 = dma.done.wait [#allocation8], 12320  }
  0x32   :  { %3429 = vsyncadd [#allocation8], 4294954976 }
  0x33   :  { %3430 = dma.done.wait [#allocation11], 4096  }
  0x34   :  { %3431 = vsyncadd [#allocation11], 4294963200  ;;  %v2908_v0 = vld [vmem:[#allocation9 + $0x74] ss:$8 sps:$4 sm:$0xff]   ;;  %v2910_v1 = vld [vmem:[#allocation9 + $0x70] ss:$8 sps:$4 sm:$0xff]  }
  0x35   :  { %1250 = vmatprep.subr.bf16.mxu0 %v2908_v0  ;;  %2862 = vmatprep.subr.bf16.mxu1 %v2908_v0  ;;  %v2911_v2 = vld [vmem:[#allocation9 + $0x64] ss:$8 sps:$4 sm:$0xff]   ;;  %v2913_v3 = vld [vmem:[#allocation9 + $0x60] ss:$8 sps:$4 sm:$0xff]   ;;  %v2914_v4 = vld [vmem:[#allocation9 + $0x54] ss:$8 sps:$4 sm:$0xff]  }
  0x36   :  { %1251 = vmatpush1.bf16.msra.mxu0 %v2910_v1  ;;  %2878 = vmatpush1.bf16.msra.mxu1 %v2910_v1  ;;  %v2916_v5 = vld [vmem:[#allocation9 + $0x50] ss:$8 sps:$4 sm:$0xff]   ;;  %v2917_v6 = vld [vmem:[#allocation9 + $0x44] ss:$8 sps:$4 sm:$0xff]   ;;  %v2919_v7 = vld [vmem:[#allocation9 + $0x40] ss:$8 sps:$4 sm:$0xff]  }
  0x37   :  { %1252 = vmatprep.subr.bf16.mxu0 %v2911_v2  ;;  %2863 = vmatprep.subr.bf16.mxu1 %v2911_v2  ;;  %v2920_v8 = vld [vmem:[#allocation9 + $0x34] ss:$8 sps:$4 sm:$0xff]   ;;  %v2922_v9 = vld [vmem:[#allocation9 + $0x30] ss:$8 sps:$4 sm:$0xff]   ;;  %v2923_v10 = vld [vmem:[#allocation9 + $0x24] ss:$8 sps:$4 sm:$0xff]  }
  0x38   :  { %v2925_v11 = vld [vmem:[#allocation9 + $0x20] ss:$8 sps:$4 sm:$0xff]   ;;  %v2926_v12 = vld [vmem:[#allocation9 + $0x14] ss:$8 sps:$4 sm:$0xff]   ;;  %v2928_v14 = vld [vmem:[#allocation9 + $0x10] ss:$8 sps:$4 sm:$0xff]  }
  0x39   :  { %v2958_v13 = vld [vmem:[#allocation4 + $0x4] ss:$24 sps:$4 sm:$0xff]   ;;  %v2956_v35 = vld [vmem:[#allocation4] ss:$24 sps:$4 sm:$0xff]   ;;  %v2974_v42 = vld [vmem:[#allocation4 + $0x34] ss:$24 sps:$4 sm:$0xff]  }
  0x3a   :  { %1253 = vmatpush1.bf16.msra.mxu0 %v2913_v3  ;;  %2879 = vmatpush1.bf16.msra.mxu1 %v2913_v3  ;;  %v2961_v15 = vld [vmem:[#allocation4 + $0x184] ss:$24 sps:$4 sm:$0xff]   ;;  %v2959_v37 = vld [vmem:[#allocation4 + $0x180] ss:$24 sps:$4 sm:$0xff]   ;;  %v2976_v43 = vld [vmem:[#allocation4 + $0x1b4] ss:$24 sps:$4 sm:$0xff]  }
  0x3b   :  { %1254 = vmatprep.subr.bf16.mxu0 %v2914_v4  ;;  %2864 = vmatprep.subr.bf16.mxu1 %v2914_v4  ;;  %v2929_v16 = vld [vmem:[#allocation9 + $0x4] ss:$8 sps:$4 sm:$0xff]   ;;  %v2931_v17 = vld [vmem:[#allocation9] ss:$8 sps:$4 sm:$0xff]   ;;  %v2932_v18 = vld [vmem:[#allocation9 + $0xf4] ss:$8 sps:$4 sm:$0xff]  }
  0x3c   :  { %1282 = vmatprep.mubr.bf16.mxu0 %v2958_v13  ;;  %1362 = vmatprep.mubr.bf16.mxu1 %v2961_v15  ;;  %v2934_v19 = vld [vmem:[#allocation9 + $0xf0] ss:$8 sps:$4 sm:$0xff]   ;;  %v2935_v20 = vld [vmem:[#allocation9 + $0xe4] ss:$8 sps:$4 sm:$0xff]   ;;  %v2937_v21 = vld [vmem:[#allocation9 + $0xe0] ss:$8 sps:$4 sm:$0xff]  }
  0x3d   :  { %v2938_v22 = vld [vmem:[#allocation9 + $0xd4] ss:$8 sps:$4 sm:$0xff]   ;;  %v2940_v23 = vld [vmem:[#allocation9 + $0xd0] ss:$8 sps:$4 sm:$0xff]   ;;  %v2941_v24 = vld [vmem:[#allocation9 + $0xc4] ss:$8 sps:$4 sm:$0xff]  }
  0x3e   :  { %1255 = vmatpush1.bf16.msra.mxu0 %v2916_v5  ;;  %2880 = vmatpush1.bf16.msra.mxu1 %v2916_v5  ;;  %v2943_v25 = vld [vmem:[#allocation9 + $0xc0] ss:$8 sps:$4 sm:$0xff]   ;;  %v2944_v26 = vld [vmem:[#allocation9 + $0xb4] ss:$8 sps:$4 sm:$0xff]   ;;  %v2946_v27 = vld [vmem:[#allocation9 + $0xb0] ss:$8 sps:$4 sm:$0xff]  }
  0x3f   :  { %1256 = vmatprep.subr.bf16.mxu0 %v2917_v6  ;;  %2865 = vmatprep.subr.bf16.mxu1 %v2917_v6  ;;  %v2947_v28 = vld [vmem:[#allocation9 + $0xa4] ss:$8 sps:$4 sm:$0xff]   ;;  %v2949_v29 = vld [vmem:[#allocation9 + $0xa0] ss:$8 sps:$4 sm:$0xff]   ;;  %v2950_v30 = vld [vmem:[#allocation9 + $0x94] ss:$8 sps:$4 sm:$0xff]  }
  0x40   :  { %v2952_v31 = vld [vmem:[#allocation9 + $0x90] ss:$8 sps:$4 sm:$0xff]   ;;  %v2953_v32 = vld [vmem:[#allocation9 + $0x84] ss:$8 sps:$4 sm:$0xff]   ;;  %v2955_v33 = vld [vmem:[#allocation9 + $0x80] ss:$8 sps:$4 sm:$0xff]  }
  0x41   :  { %v2964_v34 = vld [vmem:[#allocation9 + $0x174] ss:$8 sps:$4 sm:$0xff]   ;;  %v2962_v38 = vld [vmem:[#allocation9 + $0x170] ss:$8 sps:$4 sm:$0xff]   ;;  %v2970_v40 = vld [vmem:[#allocation9 + $0x164] ss:$8 sps:$4 sm:$0xff]  }
  0x42   :  { %1257 = vmatpush1.bf16.msra.mxu0 %v2919_v7  ;;  %2881 = vmatpush1.bf16.msra.mxu1 %v2919_v7  ;;  %v2967_v36 = vld [vmem:[#allocation9 + $0x274] ss:$8 sps:$4 sm:$0xff]   ;;  %v2965_v39 = vld [vmem:[#allocation9 + $0x270] ss:$8 sps:$4 sm:$0xff]   ;;  %v2973_v41 = vld [vmem:[#allocation9 + $0x264] ss:$8 sps:$4 sm:$0xff]  }
  0x43   :  { %1258 = vmatprep.subr.bf16.mxu0 %v2920_v8  ;;  %2866 = vmatprep.subr.bf16.mxu1 %v2920_v8  ;;  %v2968_v44 = vld [vmem:[#allocation9 + $0x160] ss:$8 sps:$4 sm:$0xff]   ;;  %v2982_v46 = vld [vmem:[#allocation9 + $0x154] ss:$8 sps:$4 sm:$0xff]   ;;  %v2980_v50 = vld [vmem:[#allocation9 + $0x150] ss:$8 sps:$4 sm:$0xff]  }
  0x44   :  { %v2971_v45 = vld [vmem:[#allocation9 + $0x260] ss:$8 sps:$4 sm:$0xff]   ;;  %v2985_v48 = vld [vmem:[#allocation9 + $0x254] ss:$8 sps:$4 sm:$0xff]   ;;  %v2983_v51 = vld [vmem:[#allocation9 + $0x250] ss:$8 sps:$4 sm:$0xff]  }
  0x45   :  { %v2978_v47 = vld [vmem:[#allocation4 + $0x30] ss:$24 sps:$4 sm:$0xff]   ;;  %v2992_v54 = vld [vmem:[#allocation4 + $0x64] ss:$24 sps:$4 sm:$0xff]   ;;  %v2996_v59 = vld [vmem:[#allocation4 + $0x60] ss:$24 sps:$4 sm:$0xff]  }
  0x46   :  { %1259 = vmatpush1.bf16.msra.mxu0 %v2922_v9  ;;  %2882 = vmatpush1.bf16.msra.mxu1 %v2922_v9  ;;  %v2979_v49 = vld [vmem:[#allocation4 + $0x1b0] ss:$24 sps:$4 sm:$0xff]   ;;  %v2994_v55 = vld [vmem:[#allocation4 + $0x1e4] ss:$24 sps:$4 sm:$0xff]   ;;  %v2997_v61 = vld [vmem:[#allocation4 + $0x1e0] ss:$24 sps:$4 sm:$0xff]  }
  0x47   :  { %1260 = vmatprep.subr.bf16.mxu0 %v2923_v10  ;;  %2867 = vmatprep.subr.bf16.mxu1 %v2923_v10  ;;  %v2988_v52 = vld [vmem:[#allocation9 + $0x144] ss:$8 sps:$4 sm:$0xff]   ;;  %v2986_v56 = vld [vmem:[#allocation9 + $0x140] ss:$8 sps:$4 sm:$0xff]   ;;  %v3000_v58 = vld [vmem:[#allocation9 + $0x134] ss:$8 sps:$4 sm:$0xff]  }
  0x48   :  { %v2991_v53 = vld [vmem:[#allocation9 + $0x244] ss:$8 sps:$4 sm:$0xff]   ;;  %v2989_v57 = vld [vmem:[#allocation9 + $0x240] ss:$8 sps:$4 sm:$0xff]   ;;  %v3003_v60 = vld [vmem:[#allocation9 + $0x234] ss:$8 sps:$4 sm:$0xff]  }
  0x49   :  { %v2998_v62 = vld [vmem:[#allocation9 + $0x130] ss:$8 sps:$4 sm:$0xff]   ;;  %v3006_v0 = vld [vmem:[#allocation9 + $0x124] ss:$8 sps:$4 sm:$0xff]   ;;  %v3004_v4 = vld [vmem:[#allocation9 + $0x120] ss:$8 sps:$4 sm:$0xff]  }
  0x4a   :  { %1261 = vmatpush1.bf16.msra.mxu0 %v2925_v11  ;;  %2883 = vmatpush1.bf16.msra.mxu1 %v2925_v11  ;;  %v3001_v63 = vld [vmem:[#allocation9 + $0x230] ss:$8 sps:$4 sm:$0xff]   ;;  %v3009_v1 = vld [vmem:[#allocation9 + $0x224] ss:$8 sps:$4 sm:$0xff]   ;;  %v3007_v5 = vld [vmem:[#allocation9 + $0x220] ss:$8 sps:$4 sm:$0xff]  }
  0x4b   :  { %1262 = vmatprep.subr.bf16.mxu0 %v2926_v12  ;;  %2868 = vmatprep.subr.bf16.mxu1 %v2926_v12  ;;  %v3010_v2 = vld [vmem:[#allocation4 + $0x94] ss:$24 sps:$4 sm:$0xff]   ;;  %v3014_v7 = vld [vmem:[#allocation4 + $0x90] ss:$24 sps:$4 sm:$0xff]   ;;  %v3030_v15 = vld [vmem:[#allocation4 + $0x244] ss:$24 sps:$4 sm:$0xff]  }
  0x4c   :  { %v3012_v3 = vld [vmem:[#allocation4 + $0x214] ss:$24 sps:$4 sm:$0xff]   ;;  %v3015_v9 = vld [vmem:[#allocation4 + $0x210] ss:$24 sps:$4 sm:$0xff]   ;;  %vm2469_vm0 = vcmask 1041408   ;;  %vm82_vm1 = vcmask 1024  }
  0x4d   :  { %v3018_v6 = vld [vmem:[#allocation9 + $0x114] ss:$8 sps:$4 sm:$0xff]   ;;  %v3016_v10 = vld [vmem:[#allocation9 + $0x110] ss:$8 sps:$4 sm:$0xff]   ;;  %v3024_v12 = vld [vmem:[#allocation9 + $0x104] ss:$8 sps:$4 sm:$0xff]  }
  0x4e   :  { %1263 = vmatpush1.bf16.msra.mxu0 %v2928_v14  ;;  %2884 = vmatpush1.bf16.msra.mxu1 %v2928_v14  ;;  %v3021_v8 = vld [vmem:[#allocation9 + $0x214] ss:$8 sps:$4 sm:$0xff]   ;;  %v3019_v11 = vld [vmem:[#allocation9 + $0x210] ss:$8 sps:$4 sm:$0xff]   ;;  %v3027_v13 = vld [vmem:[#allocation9 + $0x204] ss:$8 sps:$4 sm:$0xff]  }
  0x4f   :  { %1264 = vmatprep.subr.bf16.mxu0 %v2929_v16  ;;  %2869 = vmatprep.subr.bf16.mxu1 %v2929_v16  ;;  %v3028_v14 = vld [vmem:[#allocation4 + $0xc4] ss:$24 sps:$4 sm:$0xff]   ;;  %vm2457_vm2 = vcmask 1041409   ;;  %vm2459_vm3 = vcmask 1043459   ;;  %vm2461_vm4 = vcmask 1045509   ;;  %vm2463_vm5 = vcmask 1047559  }
  0x50   :  { %v3022_v16 = vld [vmem:[#allocation9 + $0x100] ss:$8 sps:$4 sm:$0xff]   ;;  %s3446_s20 = smov [#allocation12]  }
  0x51   :  { %s2623_s21 = sshll.u32 %s3446_s20, 4  ;;  %s2624_s21 = int_to_ptr.vmem [resolvable:$true] %s2623_s21 }
  0x52   :  { %1265 = vmatpush1.bf16.msra.mxu0 %v2931_v17  ;;  %2885 = vmatpush1.bf16.msra.mxu1 %v2931_v17  ;;  %v3025_v17 = vld [vmem:[#allocation9 + $0x200] ss:$8 sps:$4 sm:$0xff]   ;;  %s3406_s22 = scalar_lea.vmem %s2624_s21, 32  ;;  %p3411_p7 = scmp.lt.s32.totalorder %s2624_s21, %s2624_s21 }
  0x53   :  { %1266 = vmatprep.subr.bf16.mxu0 %v2932_v18  ;;  %2870 = vmatprep.subr.bf16.mxu1 %v2932_v18  ;;  %v3032_v18 = vld [vmem:[#allocation4 + $0xc0] ss:$24 sps:$4 sm:$0xff]   ;;  %p3407_p6 = scmp.ne.s32.totalorder %s2624_s21, %s3406_s22  ;;  %p3412_p8 = scmp.lt.s32.totalorder %s3406_s22, %s3406_s22 }
  0x55   :  { %p3413_p9 = por %p3412_p8, %p3411_p7 }
  0x56   :  { %1267 = vmatpush2.bf16.msra.mxu0 %v2934_v19  ;;  %2886 = vmatpush2.bf16.msra.mxu1 %v2934_v19  ;;  %v3036_v19 = vld [vmem:[#allocation9 + $0x1f4] ss:$8 sps:$4 sm:$0xff]  }
  0x57   :  { %1268 = vmatprep.subr.bf16.mxu0 %v2935_v20  ;;  %2871 = vmatprep.subr.bf16.mxu1 %v2935_v20  ;;  %v3039_v20 = vld [vmem:[#allocation9 + $0x2f4] ss:$8 sps:$4 sm:$0xff]   ;;  %p3414_p10 = pnand %p3413_p9, %p3407_p6 }
  0x5a   :  { %1269 = vmatpush2.bf16.msra.mxu0 %v2937_v21  ;;  %2887 = vmatpush2.bf16.msra.mxu1 %v2937_v21  ;;  %v3033_v21 = vld [vmem:[#allocation4 + $0x240] ss:$24 sps:$4 sm:$0xff]  }
  0x5b   :  { %1270 = vmatprep.subr.bf16.mxu0 %v2938_v22  ;;  %2872 = vmatprep.subr.bf16.mxu1 %v2938_v22  ;;  %v3034_v22 = vld [vmem:[#allocation9 + $0x1f0] ss:$8 sps:$4 sm:$0xff]  }
  0x5e   :  { %1271 = vmatpush2.bf16.msra.mxu0 %v2940_v23  ;;  %2888 = vmatpush2.bf16.msra.mxu1 %v2940_v23  ;;  %v3037_v23 = vld [vmem:[#allocation9 + $0x2f0] ss:$8 sps:$4 sm:$0xff]  }
  0x5f   :  { %1272 = vmatprep.subr.bf16.mxu0 %v2941_v24  ;;  %2873 = vmatprep.subr.bf16.mxu1 %v2941_v24  ;;  %v3042_v24 = vld [vmem:[#allocation9 + $0x1e4] ss:$8 sps:$4 sm:$0xff]  }
  0x62   :  { %1273 = vmatpush2.bf16.msra.mxu0 %v2943_v25  ;;  %2889 = vmatpush2.bf16.msra.mxu1 %v2943_v25  ;;  %v3045_v25 = vld [vmem:[#allocation9 + $0x2e4] ss:$8 sps:$4 sm:$0xff]  }
  0x63   :  { %1274 = vmatprep.subr.bf16.mxu0 %v2944_v26  ;;  %2874 = vmatprep.subr.bf16.mxu1 %v2944_v26  ;;  %v3046_v26 = vld [vmem:[#allocation4 + $0xf4] ss:$24 sps:$4 sm:$0xff]  }
  0x66   :  { %1275 = vmatpush2.bf16.msra.mxu0 %v2946_v27  ;;  %2890 = vmatpush2.bf16.msra.mxu1 %v2946_v27  ;;  %v3048_v27 = vld [vmem:[#allocation4 + $0x274] ss:$24 sps:$4 sm:$0xff]  }
  0x67   :  { %1276 = vmatprep.subr.bf16.mxu0 %v2947_v28  ;;  %2875 = vmatprep.subr.bf16.mxu1 %v2947_v28  ;;  %v3040_v28 = vld [vmem:[#allocation9 + $0x1e0] ss:$8 sps:$4 sm:$0xff]  }
  0x6a   :  { %1277 = vmatpush2.bf16.msra.mxu0 %v2949_v29  ;;  %2891 = vmatpush2.bf16.msra.mxu1 %v2949_v29  ;;  %v3043_v29 = vld [vmem:[#allocation9 + $0x2e0] ss:$8 sps:$4 sm:$0xff]  }
  0x6b   :  { %1278 = vmatprep.subr.bf16.mxu0 %v2950_v30  ;;  %2876 = vmatprep.subr.bf16.mxu1 %v2950_v30  ;;  %v3050_v30 = vld [vmem:[#allocation4 + $0xf0] ss:$24 sps:$4 sm:$0xff]  }
  0x6e   :  { %1279 = vmatpush2.bf16.msra.mxu0 %v2952_v31  ;;  %2892 = vmatpush2.bf16.msra.mxu1 %v2952_v31  ;;  %v3054_v31 = vld [vmem:[#allocation9 + $0x1d4] ss:$8 sps:$4 sm:$0xff]  }
  0x6f   :  { %1280 = vmatprep.subr.bf16.mxu0 %v2953_v32  ;;  %2877 = vmatprep.subr.bf16.mxu1 %v2953_v32  ;;  %v3057_v32 = vld [vmem:[#allocation9 + $0x2d4] ss:$8 sps:$4 sm:$0xff]  }
  0x72   :  { %1281 = vmatpush2.bf16.msra.mxu0 %v2955_v33  ;;  %2893 = vmatpush2.bf16.msra.mxu1 %v2955_v33  ;;  %v3051_v33 = vld [vmem:[#allocation4 + $0x270] ss:$24 sps:$4 sm:$0xff]  }
  0x73   :  { %1443 = vmatprep.subr.bf16.mxu1 %v2964_v34  ;;  %1636 = vmatprep.subr.bf16.mxu0 %v2967_v36  ;;  %v3052_v34 = vld [vmem:[#allocation9 + $0x1d0] ss:$8 sps:$4 sm:$0xff]   ;;  %v3060_v36 = vld [vmem:[#allocation9 + $0x1c4] ss:$8 sps:$4 sm:$0xff]  }
  0x75   :  { %1283 = vmatmul.mubr.bf16.vlgmr.msra.gmra.mxu0 %v2956_v35  ;;  %1363 = vmatmul.mubr.bf16.vlgmr.msra.gmra.mxu1 %v2959_v37  ;;  %v3055_v35 = vld [vmem:[#allocation9 + $0x2d0] ss:$8 sps:$4 sm:$0xff]   ;;  %v3063_v37 = vld [vmem:[#allocation9 + $0x2c4] ss:$8 sps:$4 sm:$0xff]  }
  0x76   :  { %1444 = vmatpush1.bf16.msra.mxu1 %v2962_v38  ;;  %1637 = vmatpush1.bf16.msra.mxu0 %v2965_v39  ;;  %v3064_v38 = vld [vmem:[#allocation4 + $0x124] ss:$24 sps:$4 sm:$0xff]  }
  0x77   :  { %1445 = vmatprep.subr.bf16.mxu1 %v2970_v40  ;;  %1638 = vmatprep.subr.bf16.mxu0 %v2973_v41  ;;  %v3066_v39 = vld [vmem:[#allocation4 + $0x2a4] ss:$24 sps:$4 sm:$0xff]  }
  0x78   :  { %1292 = vmatprep.mubr.bf16.mxu0 %v2974_v42  ;;  %1372 = vmatprep.mubr.bf16.mxu1 %v2976_v43  ;;  %v3058_v40 = vld [vmem:[#allocation9 + $0x1c0] ss:$8 sps:$4 sm:$0xff]   ;;  %v3072_v43 = vld [vmem:[#allocation9 + $0x1b4] ss:$8 sps:$4 sm:$0xff]  }
  0x79   :  { %v3061_v41 = vld [vmem:[#allocation9 + $0x2c0] ss:$8 sps:$4 sm:$0xff]  }
  0x7a   :  { %1446 = vmatpush1.bf16.msra.mxu1 %v2968_v44  ;;  %1639 = vmatpush1.bf16.msra.mxu0 %v2971_v45  ;;  %v3068_v42 = vld [vmem:[#allocation4 + $0x120] ss:$24 sps:$4 sm:$0xff]  }
  0x7b   :  { %1447 = vmatprep.subr.bf16.mxu1 %v2982_v46  ;;  %1640 = vmatprep.subr.bf16.mxu0 %v2985_v48  ;;  %v3075_v44 = vld [vmem:[#allocation9 + $0x2b4] ss:$8 sps:$4 sm:$0xff]   ;;  %v3070_v46 = vld [vmem:[#allocation9 + $0x1b0] ss:$8 sps:$4 sm:$0xff]  }
  0x7c   :  { %v3069_v45 = vld [vmem:[#allocation4 + $0x2a0] ss:$24 sps:$4 sm:$0xff]  }
  0x7d   :  { %1293 = vmatmul.mubr.bf16.gmra.mxu0 %v2978_v47  ;;  %1373 = vmatmul.mubr.bf16.gmra.mxu1 %v2979_v49  ;;  %v280_v47 = vlaneseq  ;;  %v3073_v48 = vld [vmem:[#allocation9 + $0x2b0] ss:$8 sps:$4 sm:$0xff]   ;;  %v3078_v49 = vld [vmem:[#allocation9 + $0x1a4] ss:$8 sps:$4 sm:$0xff]  }
  0x7e   :  { %1448 = vmatpush1.bf16.msra.mxu1 %v2980_v50  ;;  %1641 = vmatpush1.bf16.msra.mxu0 %v2983_v51  ;;  %v3081_v50 = vld [vmem:[#allocation9 + $0x2a4] ss:$8 sps:$4 sm:$0xff]  }
  0x7f   :  { %1449 = vmatprep.subr.bf16.mxu1 %v2988_v52  ;;  %1642 = vmatprep.subr.bf16.mxu0 %v2991_v53  ;;  %v3082_v51 = vld [vmem:[#allocation4 + $0x154] ss:$24 sps:$4 sm:$0xff]  }
  0x80   :  { %1302 = vmatprep.mubr.bf16.mxu0 %v2992_v54  ;;  %1382 = vmatprep.mubr.bf16.mxu1 %v2994_v55  ;;  %v3084_v52 = vld [vmem:[#allocation4 + $0x2d4] ss:$24 sps:$4 sm:$0xff]   ;;  %v3494_v54 = vshrl.u32 %v280_v47, 7  ;;  %v3158_v47 = vld [vmem:[#allocation4 + $0x1b8] ss:$24 sps:$4 sm:$0xff]  }
  0x81   :  { %v3076_v53 = vld [vmem:[#allocation9 + $0x1a0] ss:$8 sps:$4 sm:$0xff]  }
  0x82   :  { %1450 = vmatpush1.bf16.msra.mxu1 %v2986_v56  ;;  %1643 = vmatpush1.bf16.msra.mxu0 %v2989_v57  ;;  %4242 = vst [vmem:[#allocation17_spill] sm:$0xff] %v3494_v54  ;;  %v3079_v55 = vld [vmem:[#allocation9 + $0x2a0] ss:$8 sps:$4 sm:$0xff]  }
  0x83   :  { %1451 = vmatprep.subr.bf16.mxu1 %v3000_v58  ;;  %1644 = vmatprep.subr.bf16.mxu0 %v3003_v60  ;;  %v3086_v56 = vld [vmem:[#allocation4 + $0x150] ss:$24 sps:$4 sm:$0xff]   ;;  %v3090_v58 = vld [vmem:[#allocation9 + $0x194] ss:$8 sps:$4 sm:$0xff]  }
  0x84   :  { %v3087_v57 = vld [vmem:[#allocation4 + $0x2d0] ss:$24 sps:$4 sm:$0xff]  }
  0x85   :  { %1303 = vmatmul.mubr.bf16.gmra.mxu0 %v2996_v59  ;;  %1383 = vmatmul.mubr.bf16.gmra.mxu1 %v2997_v61  ;;  %v3093_v59 = vld [vmem:[#allocation9 + $0x294] ss:$8 sps:$4 sm:$0xff]   ;;  %v3088_v60 = vld [vmem:[#allocation9 + $0x190] ss:$8 sps:$4 sm:$0xff]  }
  0x86   :  { %1452 = vmatpush1.bf16.msra.mxu1 %v2998_v62  ;;  %1645 = vmatpush1.bf16.msra.mxu0 %v3001_v63  ;;  %v180_v61 = vld [vmem:[#allocation7] sm:$0x3]  ;;  %v3091_v62 = vld [vmem:[#allocation9 + $0x290] ss:$8 sps:$4 sm:$0xff]  }
  0x87   :  { %1453 = vmatprep.subr.bf16.mxu1 %v3006_v0  ;;  %1646 = vmatprep.subr.bf16.mxu0 %v3009_v1  ;;  %v181_v63 = vsub.f32 1.0, %v180_v61  ;;  %v286_v0 = vsub.s32 1, %v3494_v54  ;;  %v3096_v1 = vld [vmem:[#allocation9 + $0x184] ss:$8 sps:$4 sm:$0xff]  }
  0x88   :  { %1312 = vmatprep.mubr.bf16.mxu0 %v3010_v2  ;;  %1392 = vmatprep.mubr.bf16.mxu1 %v3012_v3  ;;  %v3099_v2 = vld [vmem:[#allocation9 + $0x284] ss:$8 sps:$4 sm:$0xff]  }
  0x89   :  { %v3102_v3 = vld [vmem:[#allocation4 + $0xc] ss:$24 sps:$4 sm:$0xff]   ;;  %v3177_v61 = vld [vmem:[#allocation4 + $0x250] ss:$24 sps:$4 sm:$0xff]  }
  0x8a   :  { %1454 = vmatpush1.bf16.msra.mxu1 %v3004_v4  ;;  %1647 = vmatpush1.bf16.msra.mxu0 %v3007_v5  ;;  %v2470_v4 = vsel %vm2469_vm0, %v181_v63, 0.0  ;;  %v3105_v5 = vld [vmem:[#allocation4 + $0x14] ss:$24 sps:$4 sm:$0xff]  }
  0x8b   :  { %1455 = vmatprep.subr.bf16.mxu1 %v3018_v6  ;;  %1648 = vmatprep.subr.bf16.mxu0 %v3021_v8  ;;  %v3094_v6 = vld [vmem:[#allocation9 + $0x180] ss:$8 sps:$4 sm:$0xff]  }
  0x8c   :  { %2471 = vadd.xlane.f32.xlu0 %v2470_v4  ;;  %v3097_v8 = vld [vmem:[#allocation9 + $0x280] ss:$8 sps:$4 sm:$0xff]  }
  0x8d   :  { %1313 = vmatmul.mubr.bf16.gmra.mxu0 %v3014_v7  ;;  %1393 = vmatmul.mubr.bf16.gmra.mxu1 %v3015_v9  ;;  %v3499_v7 = vrot.slane %v181_v63, %v286_v0  ;;  %v282_v9 = vsub.s32 0, %v3494_v54  ;;  %v3184_v4 = vld [vmem:[#allocation4 + $0x2ac] ss:$24 sps:$4 sm:$0xff]  }
  0x8e   :  { %1456 = vmatpush1.bf16.msra.mxu1 %v3016_v10  ;;  %1649 = vmatpush1.bf16.msra.mxu0 %v3019_v11  ;;  %v3100_v10 = vld [vmem:[#allocation4 + $0x8] ss:$24 sps:$4 sm:$0xff]  }
  0x8f   :  { %1457 = vmatprep.subr.bf16.mxu1 %v3024_v12  ;;  %1650 = vmatprep.subr.bf16.mxu0 %v3027_v13  ;;  %v3103_v11 = vld [vmem:[#allocation4 + $0x10] ss:$24 sps:$4 sm:$0xff]   ;;  %v3106_v12 = vld [vmem:[#allocation4 + $0x3c] ss:$24 sps:$4 sm:$0xff]  }
  0x90   :  { %1322 = vmatprep.mubr.bf16.mxu0 %v3028_v14  ;;  %1402 = vmatprep.mubr.bf16.mxu1 %v3030_v15  ;;  %v3108_v13 = vld [vmem:[#allocation4 + $0x44] ss:$24 sps:$4 sm:$0xff]   ;;  %v3505_v14 = vrot.slane %v181_v63, %v282_v9  ;;  %v3110_v15 = vld [vmem:[#allocation4 + $0x38] ss:$24 sps:$4 sm:$0xff]  }
  0x91   :  { %2226 = vbcast.lane.b32.xlu1 %v3499_v7, 264  ;;  %v3180_v63 = vld [vmem:[#allocation4 + $0x284] ss:$24 sps:$4 sm:$0xff]  }
  0x92   :  { %1458 = vmatpush1.bf16.msra.mxu1 %v3022_v16  ;;  %1651 = vmatpush1.bf16.msra.mxu0 %v3025_v17  ;;  %v3111_v16 = vld [vmem:[#allocation4 + $0x40] ss:$24 sps:$4 sm:$0xff]   ;;  %v3112_v17 = vld [vmem:[#allocation4 + $0x6c] ss:$24 sps:$4 sm:$0xff]  }
  0x93   :  { %1459 = vmatprep.subr.bf16.mxu1 %v3036_v19  ;;  %1652 = vmatprep.subr.bf16.mxu0 %v3039_v20  ;;  %v3116_v19 = vld [vmem:[#allocation4 + $0x68] ss:$24 sps:$4 sm:$0xff]  }
  0x94   :  { %v3117_v20 = vld [vmem:[#allocation4 + $0x70] ss:$24 sps:$4 sm:$0xff]  }
  0x95   :  { %1323 = vmatmul.mubr.bf16.gmra.mxu0 %v3032_v18  ;;  %1403 = vmatmul.mubr.bf16.gmra.mxu1 %v3033_v21  ;;  %v3114_v18 = vld [vmem:[#allocation4 + $0x74] ss:$24 sps:$4 sm:$0xff]  }
  0x96   :  { %1460 = vmatpush2.bf16.msra.mxu1 %v3034_v22  ;;  %1653 = vmatpush2.bf16.msra.mxu0 %v3037_v23  ;;  %v3118_v21 = vld [vmem:[#allocation4 + $0x9c] ss:$24 sps:$4 sm:$0xff]   ;;  %v3122_v23 = vld [vmem:[#allocation4 + $0x98] ss:$24 sps:$4 sm:$0xff]  }
  0x97   :  { %1461 = vmatprep.subr.bf16.mxu1 %v3042_v24  ;;  %1654 = vmatprep.subr.bf16.mxu0 %v3045_v25  ;;  %v3120_v22 = vld [vmem:[#allocation4 + $0xa4] ss:$24 sps:$4 sm:$0xff]   ;;  %v3123_v24 = vld [vmem:[#allocation4 + $0xa0] ss:$24 sps:$4 sm:$0xff]  }
  0x98   :  { %1332 = vmatprep.mubr.bf16.mxu0 %v3046_v26  ;;  %1412 = vmatprep.mubr.bf16.mxu1 %v3048_v27  ;;  %v3124_v25 = vld [vmem:[#allocation4 + $0xcc] ss:$24 sps:$4 sm:$0xff]   ;;  %v3128_v27 = vld [vmem:[#allocation4 + $0xc8] ss:$24 sps:$4 sm:$0xff]  }
  0x99   :  { %2155 = vbcast.lane.b32.xlu1 %v3505_v14, 256  ;;  %v3126_v26 = vld [vmem:[#allocation4 + $0xd4] ss:$24 sps:$4 sm:$0xff]  }
  0x9a   :  { %1462 = vmatpush2.bf16.msra.mxu1 %v3040_v28  ;;  %1655 = vmatpush2.bf16.msra.mxu0 %v3043_v29  ;;  %v3129_v28 = vld [vmem:[#allocation4 + $0xd0] ss:$24 sps:$4 sm:$0xff]   ;;  %v3130_v29 = vld [vmem:[#allocation4 + $0xfc] ss:$24 sps:$4 sm:$0xff]  }
  0x9b   :  { %1463 = vmatprep.subr.bf16.mxu1 %v3054_v31  ;;  %1656 = vmatprep.subr.bf16.mxu0 %v3057_v32  ;;  %v3134_v31 = vld [vmem:[#allocation4 + $0xf8] ss:$24 sps:$4 sm:$0xff]  }
  0x9c   :  { %v3135_v32 = vld [vmem:[#allocation4 + $0x100] ss:$24 sps:$4 sm:$0xff]  }
  0x9d   :  { %1333 = vmatmul.mubr.bf16.gmra.mxu0 %v3050_v30  ;;  %1413 = vmatmul.mubr.bf16.gmra.mxu1 %v3051_v33  ;;  %v3132_v30 = vld [vmem:[#allocation4 + $0x104] ss:$24 sps:$4 sm:$0xff]  }
  0x9e   :  { %1464 = vmatpush2.bf16.msra.mxu1 %v3052_v34  ;;  %1657 = vmatpush2.bf16.msra.mxu0 %v3055_v35  ;;  %v3136_v33 = vld [vmem:[#allocation4 + $0x12c] ss:$24 sps:$4 sm:$0xff]   ;;  %v3140_v35 = vld [vmem:[#allocation4 + $0x128] ss:$24 sps:$4 sm:$0xff]  }
  0x9f   :  { %1465 = vmatprep.subr.bf16.mxu1 %v3060_v36  ;;  %1658 = vmatprep.subr.bf16.mxu0 %v3063_v37  ;;  %v3138_v34 = vld [vmem:[#allocation4 + $0x134] ss:$24 sps:$4 sm:$0xff]   ;;  %v3141_v36 = vld [vmem:[#allocation4 + $0x130] ss:$24 sps:$4 sm:$0xff]  }
  0xa0   :  { %1342 = vmatprep.mubr.bf16.mxu0 %v3064_v38  ;;  %1422 = vmatprep.mubr.bf16.mxu1 %v3066_v39  ;;  %v3142_v37 = vld [vmem:[#allocation4 + $0x15c] ss:$24 sps:$4 sm:$0xff]   ;;  %v3146_v39 = vld [vmem:[#allocation4 + $0x158] ss:$24 sps:$4 sm:$0xff]  }
  0xa1   :  { %2159 = vbcast.lane.b32.xlu1 %v3505_v14, 264  ;;  %v3144_v38 = vld [vmem:[#allocation4 + $0x164] ss:$24 sps:$4 sm:$0xff]  }
  0xa2   :  { %1466 = vmatpush2.bf16.msra.mxu1 %v3058_v40  ;;  %1659 = vmatpush2.bf16.msra.mxu0 %v3061_v41  ;;  %v3147_v40 = vld [vmem:[#allocation4 + $0x160] ss:$24 sps:$4 sm:$0xff]   ;;  %v3148_v41 = vld [vmem:[#allocation4 + $0x18c] ss:$24 sps:$4 sm:$0xff]  }
  0xa3   :  { %1467 = vmatprep.subr.bf16.mxu1 %v3072_v43  ;;  %1660 = vmatprep.subr.bf16.mxu0 %v3075_v44  ;;  %v3152_v43 = vld [vmem:[#allocation4 + $0x188] ss:$24 sps:$4 sm:$0xff]  }
  0xa4   :  { %2222 = vbcast.lane.b32.xlu0 %v3499_v7, 256  ;;  %v3153_v44 = vld [vmem:[#allocation4 + $0x190] ss:$24 sps:$4 sm:$0xff]  }
  0xa5   :  { %1343 = vmatmul.mubr.bf16.gmra.mxu0 %v3068_v42  ;;  %1423 = vmatmul.mubr.bf16.gmra.mxu1 %v3069_v45  ;;  %v3150_v42 = vld [vmem:[#allocation4 + $0x194] ss:$24 sps:$4 sm:$0xff]  }
  0xa6   :  { %1468 = vmatpush2.bf16.msra.mxu1 %v3070_v46  ;;  %1661 = vmatpush2.bf16.msra.mxu0 %v3073_v48  ;;  %v3154_v45 = vld [vmem:[#allocation4 + $0x1bc] ss:$24 sps:$4 sm:$0xff]   ;;  %v3159_v48 = vld [vmem:[#allocation4 + $0x1c0] ss:$24 sps:$4 sm:$0xff]  }
  0xa7   :  { %1469 = vmatprep.subr.bf16.mxu1 %v3078_v49  ;;  %1662 = vmatprep.subr.bf16.mxu0 %v3081_v50  ;;  %v3156_v46 = vld [vmem:[#allocation4 + $0x1c4] ss:$24 sps:$4 sm:$0xff]   ;;  %v3162_v50 = vld [vmem:[#allocation4 + $0x1f4] ss:$24 sps:$4 sm:$0xff]  }
  0xa8   :  { %1352 = vmatprep.mubr.bf16.mxu0 %v3082_v51  ;;  %1432 = vmatprep.mubr.bf16.mxu1 %v3084_v52  ;;  %v3160_v49 = vld [vmem:[#allocation4 + $0x1ec] ss:$24 sps:$4 sm:$0xff]   ;;  %v3164_v51 = vld [vmem:[#allocation4 + $0x1e8] ss:$24 sps:$4 sm:$0xff]  }
  0xa9   :  { %2230 = vbcast.lane.b32.xlu1 %v3499_v7, 272  ;;  %2238 = vbcast.lane.b32.xlu0 %v3499_v7, 288  ;;  %v3165_v52 = vld [vmem:[#allocation4 + $0x1f0] ss:$24 sps:$4 sm:$0xff]  }
  0xaa   :  { %1470 = vmatpush2.bf16.msra.mxu1 %v3076_v53  ;;  %1663 = vmatpush2.bf16.msra.mxu0 %v3079_v55  ;;  %v3166_v53 = vld [vmem:[#allocation4 + $0x21c] ss:$24 sps:$4 sm:$0xff]  }
  0xab   :  { %1471 = vmatprep.subr.bf16.mxu1 %v3090_v58  ;;  %1664 = vmatprep.subr.bf16.mxu0 %v3093_v59  ;;  %v3168_v55 = vld [vmem:[#allocation4 + $0x224] ss:$24 sps:$4 sm:$0xff]   ;;  %v3174_v59 = vld [vmem:[#allocation4 + $0x254] ss:$24 sps:$4 sm:$0xff]  }
  0xac   :  { %v3172_v58 = vld [vmem:[#allocation4 + $0x24c] ss:$24 sps:$4 sm:$0xff]  }
  0xad   :  { %1353 = vmatmul.mubr.bf16.gmra.mxu0 %v3086_v56  ;;  %1433 = vmatmul.mubr.bf16.gmra.mxu1 %v3087_v57  ;;  %v3170_v56 = vld [vmem:[#allocation4 + $0x218] ss:$24 sps:$4 sm:$0xff]  }
  0xae   :  { %1472 = vmatpush2.bf16.msra.mxu1 %v3088_v60  ;;  %1665 = vmatpush2.bf16.msra.mxu0 %v3091_v62  ;;  %v3171_v57 = vld [vmem:[#allocation4 + $0x220] ss:$24 sps:$4 sm:$0xff]   ;;  %v3178_v62 = vld [vmem:[#allocation4 + $0x27c] ss:$24 sps:$4 sm:$0xff]  }
  0xaf   :  { %1473 = vmatprep.subr.bf16.mxu1 %v3096_v1  ;;  %1666 = vmatprep.subr.bf16.mxu0 %v3099_v2  ;;  %v3176_v60 = vld [vmem:[#allocation4 + $0x248] ss:$24 sps:$4 sm:$0xff]   ;;  %v3442_v1 = vmov 0.0   ;;  %v3182_v2 = vld [vmem:[#allocation4 + $0x278] ss:$24 sps:$4 sm:$0xff]  }
  0xb0   :  { %1475 = vmatprep.mubr.bf16.mxu1 %v3102_v3  ;;  %1668 = vmatprep.mubr.bf16.mxu0 %v3105_v5  ;;  %81 = vst [vmem:[#allocation2] sm:$0xf] %v3442_v1  ;;  %83 = vst.msk [vmem:[#allocation3] sm:$0x3] %vm82_vm1, %v3442_v1  ;;  %v3183_v3 = vld [vmem:[#allocation4 + $0x280] ss:$24 sps:$4 sm:$0xff]  }
  0xb1   :  { %2163 = vbcast.lane.b32.xlu1 %v3505_v14, 272  ;;  %2242 = vbcast.lane.b32.xlu0 %v3499_v7, 296  ;;  %v3186_v5 = vld [vmem:[#allocation4 + $0x2b4] ss:$24 sps:$4 sm:$0xff]  }
  0xb2   :  { %1474 = vmatpush2.bf16.msra.mxu1 %v3094_v6  ;;  %1667 = vmatpush2.bf16.msra.mxu0 %v3097_v8  ;;  %v3188_v6 = vld [vmem:[#allocation4 + $0x2a8] ss:$24 sps:$4 sm:$0xff]   ;;  %v3190_v8 = vld [vmem:[#allocation4 + $0x2dc] ss:$24 sps:$4 sm:$0xff]  }
  0xb5   :  { %1476 = vmatmul.mubr.bf16.vlgmr.msra.gmra.mxu1 %v3100_v10  ;;  %1669 = vmatmul.mubr.bf16.vlgmr.msra.gmra.mxu0 %v3103_v11  ;;  %v3192_v10 = vld [vmem:[#allocation4 + $0x2e4] ss:$24 sps:$4 sm:$0xff]   ;;  %v3194_v11 = vld [vmem:[#allocation4 + $0x2d8] ss:$24 sps:$4 sm:$0xff]  }
  0xb6   :  { %1485 = vmatprep.mubr.bf16.mxu1 %v3106_v12  ;;  %1678 = vmatprep.mubr.bf16.mxu0 %v3108_v13  ;;  %v3195_v12 = vld [vmem:[#allocation4 + $0x2e0] ss:$24 sps:$4 sm:$0xff]  }
  0xb7   :  { %2234 = vbcast.lane.b32.xlu1 %v3499_v7, 280  ;;  %2246 = vbcast.lane.b32.xlu0 %v3499_v7, 304  ;;  %v278_v13 = vld [vmem:[%s4233_s3] sm:$0x3] }
  0xbb   :  { %2167 = vbcast.lane.b32.xlu1 %v3505_v14, 280  ;;  %2250 = vbcast.lane.b32.xlu0 %v3499_v7, 312 }
  0xbd   :  { %1486 = vmatmul.mubr.bf16.gmra.mxu1 %v3110_v15  ;;  %1679 = vmatmul.mubr.bf16.gmra.mxu0 %v3111_v16  ;;  %v3548_v15 = vrot.slane %v278_v13, %v286_v0  ;;  %v2468_v16 = vld [vmem:[#allocation3] sm:$0x3]  ;;  %v3443_v0 = vmov 0  }
  0xbe   :  { %1495 = vmatprep.mubr.bf16.mxu1 %v3112_v17  ;;  %1688 = vmatprep.mubr.bf16.mxu0 %v3114_v18 }
  0xbf   :  { %2171 = vbcast.lane.b32.xlu1 %v3505_v14, 288  ;;  %2254 = vbcast.lane.b32.xlu0 %v3499_v7, 320 }
  0xc0   :  { %2907 = vset.pattern.permute.xlu0 %v3443_v0 }
  0xc3   :  { %2175 = vbcast.lane.b32.xlu1 %v3505_v14, 296  ;;  %2258 = vbcast.lane.b32.xlu0 %v3499_v7, 328 }
  0xc5   :  { %1496 = vmatmul.mubr.bf16.gmra.mxu1 %v3116_v19  ;;  %1689 = vmatmul.mubr.bf16.gmra.mxu0 %v3117_v20 }
  0xc6   :  { %1505 = vmatprep.mubr.bf16.mxu1 %v3118_v21  ;;  %1698 = vmatprep.mubr.bf16.mxu0 %v3120_v22 }
  0xc7   :  { %2179 = vbcast.lane.b32.xlu1 %v3505_v14, 304  ;;  %2262 = vbcast.lane.b32.xlu0 %v3499_v7, 336 }
  0xcb   :  { %2183 = vbcast.lane.b32.xlu1 %v3505_v14, 312  ;;  %2266 = vbcast.lane.b32.xlu0 %v3499_v7, 344 }
  0xcd   :  { %1506 = vmatmul.mubr.bf16.gmra.mxu1 %v3122_v23  ;;  %1699 = vmatmul.mubr.bf16.gmra.mxu0 %v3123_v24 }
  0xce   :  { %1515 = vmatprep.mubr.bf16.mxu1 %v3124_v25  ;;  %1708 = vmatprep.mubr.bf16.mxu0 %v3126_v26 }
  0xcf   :  { %2187 = vbcast.lane.b32.xlu1 %v3505_v14, 320  ;;  %2270 = vbcast.lane.b32.xlu0 %v3499_v7, 352 }
  0xd3   :  { %2191 = vbcast.lane.b32.xlu1 %v3505_v14, 328  ;;  %2274 = vbcast.lane.b32.xlu0 %v3499_v7, 360 }
  0xd5   :  { %1516 = vmatmul.mubr.bf16.gmra.mxu1 %v3128_v27  ;;  %1709 = vmatmul.mubr.bf16.gmra.mxu0 %v3129_v28 }
  0xd6   :  { %1525 = vmatprep.mubr.bf16.mxu1 %v3130_v29  ;;  %1718 = vmatprep.mubr.bf16.mxu0 %v3132_v30 }
  0xd7   :  { %2195 = vbcast.lane.b32.xlu1 %v3505_v14, 336  ;;  %2278 = vbcast.lane.b32.xlu0 %v3499_v7, 368 }
  0xdb   :  { %2199 = vbcast.lane.b32.xlu1 %v3505_v14, 344  ;;  %2282 = vbcast.lane.b32.xlu0 %v3499_v7, 376  ;;  %v3189_v7 = vld [vmem:[#allocation4 + $0x2b0] ss:$24 sps:$4 sm:$0xff]  }
  0xdd   :  { %1526 = vmatmul.mubr.bf16.gmra.mxu1 %v3134_v31  ;;  %1719 = vmatmul.mubr.bf16.gmra.mxu0 %v3135_v32 }
  0xde   :  { %1535 = vmatprep.mubr.bf16.mxu1 %v3136_v33  ;;  %1728 = vmatprep.mubr.bf16.mxu0 %v3138_v34 }
  0xdf   :  { %2203 = vbcast.lane.b32.xlu1 %v3505_v14, 352 }
  0xe3   :  { %2207 = vbcast.lane.b32.xlu1 %v3505_v14, 360 }
  0xe5   :  { %1536 = vmatmul.mubr.bf16.gmra.mxu1 %v3140_v35  ;;  %1729 = vmatmul.mubr.bf16.gmra.mxu0 %v3141_v36 }
  0xe6   :  { %1545 = vmatprep.mubr.bf16.mxu1 %v3142_v37  ;;  %1738 = vmatprep.mubr.bf16.mxu0 %v3144_v38 }
  0xe7   :  { %2211 = vbcast.lane.b32.xlu1 %v3505_v14, 368 }
  0xeb   :  { %2215 = vbcast.lane.b32.xlu1 %v3505_v14, 376  ;;  %v3544_v14 = vrot.slane %v278_v13, %v282_v9 }
  0xed   :  { %1546 = vmatmul.mubr.bf16.gmra.mxu1 %v3146_v39  ;;  %1739 = vmatmul.mubr.bf16.gmra.mxu0 %v3147_v40 }
  0xee   :  { %1555 = vmatprep.mubr.bf16.mxu1 %v3148_v41  ;;  %1748 = vmatprep.mubr.bf16.mxu0 %v3150_v42 }
  0xf5   :  { %1556 = vmatmul.mubr.bf16.gmra.mxu1 %v3152_v43  ;;  %1749 = vmatmul.mubr.bf16.gmra.mxu0 %v3153_v44 }
  0xf6   :  { %1565 = vmatprep.mubr.bf16.mxu1 %v3154_v45  ;;  %1758 = vmatprep.mubr.bf16.mxu0 %v3156_v46 }
  0xfd   :  { %1566 = vmatmul.mubr.bf16.gmra.mxu1 %v3158_v47  ;;  %1759 = vmatmul.mubr.bf16.gmra.mxu0 %v3159_v48 }
  0xfe   :  { %1575 = vmatprep.mubr.bf16.mxu1 %v3160_v49  ;;  %1768 = vmatprep.mubr.bf16.mxu0 %v3162_v50  ;;  %v2527_v50 = vld [vmem:[#allocation10 + $0xf8] sm:$0xff] }
  0xff   :  { %2827 = vmatprep.subr.mxu1 %v2527_v50 }
 0x105   :  { %1576 = vmatmul.mubr.bf16.gmra.mxu1 %v3164_v51  ;;  %1769 = vmatmul.mubr.bf16.gmra.mxu0 %v3165_v52  ;;  %v2511_v51 = vld [vmem:[#allocation10 + $0x78] sm:$0xff] }
 0x106   :  { %1585 = vmatprep.mubr.bf16.mxu1 %v3166_v53  ;;  %1778 = vmatprep.mubr.bf16.mxu0 %v3168_v55 }
 0x107   :  { %2828 = vmatpush3.msra.mxu1 %v2511_v51 }
 0x10d   :  { %1586 = vmatmul.mubr.bf16.gmra.mxu1 %v3170_v56  ;;  %1779 = vmatmul.mubr.bf16.gmra.mxu0 %v3171_v57 }
 0x10e   :  { %1595 = vmatprep.mubr.bf16.mxu1 %v3172_v58  ;;  %1788 = vmatprep.mubr.bf16.mxu0 %v3174_v59 }
 0x115   :  { %1596 = vmatmul.mubr.bf16.gmra.mxu1 %v3176_v60  ;;  %1789 = vmatmul.mubr.bf16.gmra.mxu0 %v3177_v61  ;;  %v2472_v21 = vpop.xlane.xlu0 %2471 }
 0x116   :  { %1605 = vmatprep.mubr.bf16.mxu1 %v3178_v62  ;;  %1798 = vmatprep.mubr.bf16.mxu0 %v3180_v63  ;;  %v2473_v24 = vadd.f32 %v2472_v21, %v2468_v16 }
 0x118   :  { %2475 = vst.msk [vmem:[#allocation3] sm:$0x3] %vm82_vm1, %v2473_v24 }
 0x11d   :  { %1606 = vmatmul.mubr.bf16.gmra.mxu1 %v3182_v2  ;;  %1799 = vmatmul.mubr.bf16.gmra.mxu0 %v3183_v3 }
 0x11e   :  { %1615 = vmatprep.mubr.bf16.mxu1 %v3184_v4  ;;  %1808 = vmatprep.mubr.bf16.mxu0 %v3186_v5 }
 0x11f   :  { %v2479_v42 = vld [vmem:[#allocation3] sm:$0x3] }
 0x120   :  { %v2480_v45 = vmax.f32 %v2479_v42, 1.0 }
 0x122   :  { %3196 = vrcp.f32 %v2480_v45 }
 0x125   :  { %1616 = vmatmul.mubr.bf16.gmra.mxu1 %v3188_v6  ;;  %1809 = vmatmul.mubr.bf16.gmra.mxu0 %v3189_v7 }
 0x126   :  { %1625 = vmatprep.mubr.bf16.mxu1 %v3190_v8  ;;  %1818 = vmatprep.mubr.bf16.mxu0 %v3192_v10 }
 0x12d   :  { %1626 = vmatmul.mubr.bf16.gmra.mxu1 %v3194_v11  ;;  %1819 = vmatmul.mubr.bf16.gmra.mxu0 %v3195_v12 }
 0x135   :  { %v1284_v17 = vpop.f32.mrf.mxu0  ;;  %v1364_v18 = vpop.f32.mrf.mxu1 }
 0x136   :  { %v3551_v19 = vadd.f32 %v1284_v17, %v3544_v14  ;;  %v3554_v20 = vadd.f32 %v1364_v18, %v3544_v14  ;;  %v3197_v17 = vpop.eup %3196 }
 0x137   :  { %v1286_v22 = vpop.f32.mrf.mxu0  ;;  %v1366_v23 = vpop.f32.mrf.mxu1  ;;  %2485 = vperm.xlu0 %2907, %v3197_v17  }
 0x138   :  { %v3557_v9 = vadd.f32 %v1286_v22, %v3548_v15  ;;  %v3560_v25 = vadd.f32 %v1366_v23, %v3548_v15 }
 0x139   :  { %v1288_v26 = vpop.f32.mrf.mxu0  ;;  %v1368_v27 = vpop.f32.mrf.mxu1 }
 0x13a   :  { %v3564_v28 = vadd.f32 %v1288_v26, %v3544_v14  ;;  %v3567_v29 = vadd.f32 %v1368_v27, %v3544_v14 }
 0x13b   :  { %v1290_v30 = vpop.f32.mrf.mxu0  ;;  %v1370_v31 = vpop.f32.mrf.mxu1 }
 0x13c   :  { %v3570_v32 = vadd.f32 %v1290_v30, %v3548_v15  ;;  %v3573_v33 = vadd.f32 %v1370_v31, %v3548_v15 }
 0x13d   :  { %v1294_v34 = vpop.f32.mrf.mxu0  ;;  %v1374_v35 = vpop.f32.mrf.mxu1 }
 0x13e   :  { %v3576_v36 = vadd.f32 %v1294_v34, %v3544_v14  ;;  %v3579_v37 = vadd.f32 %v1374_v35, %v3544_v14 }
 0x13f   :  { %v1296_v38 = vpop.f32.mrf.mxu0  ;;  %v1376_v39 = vpop.f32.mrf.mxu1 }
 0x140   :  { %v3582_v40 = vadd.f32 %v1296_v38, %v3548_v15  ;;  %v3585_v41 = vadd.f32 %v1376_v39, %v3548_v15 }
 0x141   :  { %v1298_v43 = vpop.f32.mrf.mxu0  ;;  %v1378_v44 = vpop.f32.mrf.mxu1 }
 0x142   :  { %v3588_v46 = vadd.f32 %v1298_v43, %v3544_v14  ;;  %v3591_v47 = vadd.f32 %v1378_v44, %v3544_v14 }
 0x143   :  { %v1300_v48 = vpop.f32.mrf.mxu0  ;;  %v1380_v49 = vpop.f32.mrf.mxu1 }
 0x144   :  { %4243 = vst [vmem:[#allocation18_spill] sm:$0xff] %v3591_v47  ;;  %v3594_v52 = vadd.f32 %v1300_v48, %v3548_v15  ;;  %v3597_v53 = vadd.f32 %v1380_v49, %v3548_v15 }
 0x145   :  { %v1304_v55 = vpop.f32.mrf.mxu0  ;;  %v1384_v56 = vpop.f32.mrf.mxu1 }
 0x146   :  { %4244 = vst [vmem:[#allocation19_spill] sm:$0xff] %v3597_v53  ;;  %v3600_v57 = vadd.f32 %v1304_v55, %v3544_v14  ;;  %v3603_v58 = vadd.f32 %v1384_v56, %v3544_v14 }
 0x147   :  { %v1306_v59 = vpop.f32.mrf.mxu0  ;;  %v1386_v60 = vpop.f32.mrf.mxu1 }
 0x148   :  { %4245 = vst [vmem:[#allocation20_spill] sm:$0xff] %v3603_v58  ;;  %v3606_v61 = vadd.f32 %v1306_v59, %v3548_v15  ;;  %v3609_v62 = vadd.f32 %v1386_v60, %v3548_v15  ;;  %v2519_v58 = vld [vmem:[#allocation10 + $0xb8] sm:$0xff] }
 0x149   :  { %v1308_v63 = vpop.f32.mrf.mxu0  ;;  %v1388_v1 = vpop.f32.mrf.mxu1 }
 0x14a   :  { %4246 = vst [vmem:[#allocation21_spill] sm:$0xff] %v3609_v62  ;;  %v3612_v2 = vadd.f32 %v1308_v63, %v3544_v14  ;;  %v3615_v3 = vadd.f32 %v1388_v1, %v3544_v14 }
 0x14b   :  { %v1310_v4 = vpop.f32.mrf.mxu0  ;;  %v1390_v5 = vpop.f32.mrf.mxu1 }
 0x14c   :  { %4247 = vst [vmem:[#allocation22_spill] sm:$0xff] %v3615_v3  ;;  %v3618_v6 = vadd.f32 %v1310_v4, %v3548_v15  ;;  %v3621_v7 = vadd.f32 %v1390_v5, %v3548_v15 }
 0x14d   :  { %v1314_v8 = vpop.f32.mrf.mxu0  ;;  %v1394_v10 = vpop.f32.mrf.mxu1 }
 0x14e   :  { %4248 = vst [vmem:[#allocation23_spill] sm:$0xff] %v3621_v7  ;;  %v3624_v11 = vadd.f32 %v1314_v8, %v3544_v14  ;;  %v3627_v12 = vadd.f32 %v1394_v10, %v3544_v14  ;;  %v2526_v8 = vld [vmem:[#allocation10 + $0xf0] sm:$0xff] }
 0x14f   :  { %v1316_v13 = vpop.f32.mrf.mxu0  ;;  %v1396_v16 = vpop.f32.mrf.mxu1  ;;  %v2510_v10 = vld [vmem:[#allocation10 + $0x70] sm:$0xff]  ;;  %2829 = vmatprep.subr.mxu1 %v2526_v8 }
 0x150   :  { %4249 = vst [vmem:[#allocation24_spill] sm:$0xff] %v3627_v12  ;;  %v3630_v18 = vadd.f32 %v1316_v13, %v3548_v15  ;;  %v3633_v21 = vadd.f32 %v1396_v16, %v3548_v15  ;;  %2830 = vmatpush3.msra.mxu1 %v2510_v10 }
 0x151   :  { %v1318_v22 = vpop.f32.mrf.mxu0  ;;  %v1398_v23 = vpop.f32.mrf.mxu1 }
 0x152   :  { %4250 = vst [vmem:[#allocation25_spill] sm:$0xff] %v3633_v21  ;;  %v3636_v24 = vadd.f32 %v1318_v22, %v3544_v14  ;;  %v3639_v0 = vadd.f32 %v1398_v23, %v3544_v14 }
 0x153   :  { %v1320_v26 = vpop.f32.mrf.mxu0  ;;  %v1400_v27 = vpop.f32.mrf.mxu1 }
 0x154   :  { %4251 = vst [vmem:[#allocation26_spill] sm:$0xff] %v3639_v0  ;;  %v3642_v30 = vadd.f32 %v1320_v26, %v3548_v15  ;;  %v3645_v31 = vadd.f32 %v1400_v27, %v3548_v15  ;;  %v2525_v27 = vld [vmem:[#allocation10 + $0xe8] sm:$0xff] }
 0x155   :  { %v1324_v34 = vpop.f32.mrf.mxu0  ;;  %v1404_v35 = vpop.f32.mrf.mxu1  ;;  %2831 = vmatprep.subr.mxu1 %v2525_v27 }
 0x156   :  { %4252 = vst [vmem:[#allocation27_spill] sm:$0xff] %v3645_v31  ;;  %v3648_v38 = vadd.f32 %v1324_v34, %v3544_v14  ;;  %v3651_v39 = vadd.f32 %v1404_v35, %v3544_v14  ;;  %v2509_v34 = vld [vmem:[#allocation10 + $0x68] sm:$0xff] }
 0x157   :  { %v1326_v42 = vpop.f32.mrf.mxu0  ;;  %v1406_v43 = vpop.f32.mrf.mxu1  ;;  %2832 = vmatpush3.msra.mxu1 %v2509_v34 }
 0x158   :  { %4253 = vst [vmem:[#allocation28_spill] sm:$0xff] %v3651_v39  ;;  %v3654_v44 = vadd.f32 %v1326_v42, %v3548_v15  ;;  %v3657_v45 = vadd.f32 %v1406_v43, %v3548_v15 }
 0x159   :  { %v1328_v48 = vpop.f32.mrf.mxu0  ;;  %v1408_v49 = vpop.f32.mrf.mxu1 }
 0x15a   :  { %4254 = vst [vmem:[#allocation29_spill] sm:$0xff] %v3657_v45  ;;  %v3660_v50 = vadd.f32 %v1328_v48, %v3544_v14  ;;  %v3663_v51 = vadd.f32 %v1408_v49, %v3544_v14 }
 0x15b   :  { %v1330_v55 = vpop.f32.mrf.mxu0  ;;  %v1410_v56 = vpop.f32.mrf.mxu1 }
 0x15c   :  { %4255 = vst [vmem:[#allocation30_spill] sm:$0xff] %v3663_v51  ;;  %v3666_v59 = vadd.f32 %v1330_v55, %v3548_v15  ;;  %v3669_v60 = vadd.f32 %v1410_v56, %v3548_v15  ;;  %v3695_v56 = vpop.permute.xlu1 %2226  ;;  %v2506_v51 = vld [vmem:[#allocation10 + $0x50] sm:$0xff] }
 0x15d   :  { %v1334_v63 = vpop.f32.mrf.mxu0  ;;  %v1414_v1 = vpop.f32.mrf.mxu1  ;;  %4261 = vst [vmem:[#allocation36_spill] sm:$0xff] %v3695_v56 }
 0x15e   :  { %4256 = vst [vmem:[#allocation31_spill] sm:$0xff] %v3669_v60  ;;  %v3672_v4 = vadd.f32 %v1334_v63, %v3544_v14  ;;  %v3675_v5 = vadd.f32 %v1414_v1, %v3544_v14  ;;  %v2522_v60 = vld [vmem:[#allocation10 + $0xd0] sm:$0xff] }
 0x15f   :  { %v1336_v13 = vpop.f32.mrf.mxu0  ;;  %v1416_v16 = vpop.f32.mrf.mxu1 }
 0x160   :  { %4257 = vst [vmem:[#allocation32_spill] sm:$0xff] %v3675_v5  ;;  %v3678_v17 = vadd.f32 %v1336_v13, %v3548_v15  ;;  %v3681_v22 = vadd.f32 %v1416_v16, %v3548_v15  ;;  %v3715_v54 = vpop.permute.xlu1 %2155 }
 0x161   :  { %v1338_v23 = vpop.f32.mrf.mxu0  ;;  %v1418_v26 = vpop.f32.mrf.mxu1 }
 0x162   :  { %4258 = vst [vmem:[#allocation33_spill] sm:$0xff] %v3681_v22  ;;  %v3684_v35 = vadd.f32 %v1338_v23, %v3544_v14  ;;  %v3687_v42 = vadd.f32 %v1418_v26, %v3544_v14  ;;  %v2524_v23 = vld [vmem:[#allocation10 + $0xe0] sm:$0xff] }
 0x163   :  { %v1340_v43 = vpop.f32.mrf.mxu0  ;;  %v1420_v48 = vpop.f32.mrf.mxu1  ;;  %v2508_v26 = vld [vmem:[#allocation10 + $0x60] sm:$0xff]  ;;  %2833 = vmatprep.subr.mxu1 %v2524_v23 }
 0x164   :  { %4259 = vst [vmem:[#allocation34_spill] sm:$0xff] %v3687_v42  ;;  %v3690_v49 = vadd.f32 %v1340_v43, %v3548_v15  ;;  %v3693_v55 = vadd.f32 %v1420_v48, %v3548_v15  ;;  %2834 = vmatpush3.msra.mxu1 %v2508_v26  ;;  %v2523_v42 = vld [vmem:[#allocation10 + $0xd8] sm:$0xff] }
 0x165   :  { %v1344_v63 = vpop.f32.mrf.mxu0  ;;  %v1424_v1 = vpop.f32.mrf.mxu1  ;;  %2835 = vmatprep.subr.mxu1 %v2523_v42 }
 0x166   :  { %4260 = vst [vmem:[#allocation35_spill] sm:$0xff] %v3693_v55  ;;  %v3698_v8 = vadd.f32 %v1344_v63, %v3544_v14  ;;  %v3701_v10 = vadd.f32 %v1424_v1, %v3544_v14 }
 0x167   :  { %v1346_v13 = vpop.f32.mrf.mxu0  ;;  %v1426_v16 = vpop.f32.mrf.mxu1 }
 0x168   :  { %4262 = vst [vmem:[#allocation37_spill] sm:$0xff] %v3701_v10  ;;  %v3704_v27 = vadd.f32 %v1346_v13, %v3548_v15  ;;  %v3707_v34 = vadd.f32 %v1426_v16, %v3548_v15  ;;  %v2507_v13 = vld [vmem:[#allocation10 + $0x58] sm:$0xff] }
 0x169   :  { %v1348_v43 = vpop.f32.mrf.mxu0  ;;  %v1428_v48 = vpop.f32.mrf.mxu1  ;;  %2836 = vmatpush3.msra.mxu1 %v2507_v13 }
 0x16a   :  { %4263 = vst [vmem:[#allocation38_spill] sm:$0xff] %v3707_v34  ;;  %v3710_v63 = vadd.f32 %v1348_v43, %v3544_v14  ;;  %v3713_v1 = vadd.f32 %v1428_v48, %v3544_v14  ;;  %2837 = vmatprep.subr.mxu1 %v2522_v60 }
 0x16b   :  { %v1350_v10 = vpop.f32.mrf.mxu0  ;;  %v1430_v55 = vpop.f32.mrf.mxu1  ;;  %2838 = vmatpush3.msra.mxu1 %v2506_v51  ;;  %v2505_v51 = vld [vmem:[#allocation10 + $0x48] sm:$0xff] }
 0x16c   :  { %4264 = vst [vmem:[#allocation39_spill] sm:$0xff] %v3713_v1  ;;  %v3718_v22 = vadd.f32 %v1350_v10, %v3548_v15  ;;  %v3721_v16 = vadd.f32 %v1430_v55, %v3548_v15  ;;  %v3735_v55 = vpop.permute.xlu1 %2159 }
 0x16d   :  { %v1354_v23 = vpop.f32.mrf.mxu0  ;;  %v1434_v26 = vpop.f32.mrf.mxu1 }
 0x16e   :  { %4265 = vst [vmem:[#allocation40_spill] sm:$0xff] %v3721_v16  ;;  %v3724_v43 = vadd.f32 %v1354_v23, %v3544_v14  ;;  %v3727_v48 = vadd.f32 %v1434_v26, %v3544_v14 }
 0x16f   :  { %v1356_v1 = vpop.f32.mrf.mxu0  ;;  %v1436_v34 = vpop.f32.mrf.mxu1 }
 0x170   :  { %4266 = vst [vmem:[#allocation41_spill] sm:$0xff] %v3727_v48  ;;  %v3730_v5 = vadd.f32 %v1356_v1, %v3548_v15  ;;  %v3733_v10 = vadd.f32 %v1436_v34, %v3548_v15  ;;  %v3750_v39 = vpop.permute.xlu1 %2230 }
 0x171   :  { %v1358_v42 = vpop.f32.mrf.mxu0  ;;  %v1438_v16 = vpop.f32.mrf.mxu1  ;;  %4270 = vst [vmem:[#allocation45_spill] sm:$0xff] %v3750_v39 }
 0x172   :  { %4267 = vst [vmem:[#allocation42_spill] sm:$0xff] %v3733_v10  ;;  %v3738_v13 = vadd.f32 %v1358_v42, %v3544_v14  ;;  %v3741_v23 = vadd.f32 %v1438_v16, %v3544_v14 }
 0x173   :  { %v1360_v26 = vpop.f32.mrf.mxu0  ;;  %v1440_v48 = vpop.f32.mrf.mxu1 }
 0x174   :  { %4268 = vst [vmem:[#allocation43_spill] sm:$0xff] %v3741_v23  ;;  %v3744_v1 = vadd.f32 %v1360_v26, %v3548_v15  ;;  %v3747_v34 = vadd.f32 %v1440_v48, %v3548_v15  ;;  %v3757_v39 = vpop.permute.xlu1 %2163 }
 0x175   :  { %v1477_v10 = vpop.f32.mrf.mxu1  ;;  %v1670_v45 = vpop.f32.mrf.mxu0 }
 0x176   :  { %4269 = vst [vmem:[#allocation44_spill] sm:$0xff] %v3747_v34  ;;  %v1478_v42 = vadd.f32 %v1477_v10, %v3551_v19  ;;  %v2521_v34 = vld [vmem:[#allocation10 + $0xc8] sm:$0xff] }
 0x177   :  { %v1479_v14 = vpop.f32.mrf.mxu1  ;;  %v1672_v16 = vpop.f32.mrf.mxu0  ;;  %2839 = vmatprep.subr.mxu1 %v2521_v34 }
 0x178   :  { %v1671_v23 = vadd.f32 %v1670_v45, %v1478_v42  ;;  %v1480_v31 = vadd.f32 %v1479_v14, %v3557_v9  ;;  %2840 = vmatpush3.msra.mxu1 %v2505_v51 }
 0x179   :  { %v1481_v0 = vpop.f32.mrf.mxu1  ;;  %v1674_v21 = vpop.f32.mrf.mxu0 }
 0x17a   :  { %v1893_v26 = vmul.f32 0.70710677, %v1671_v23  ;;  %v3753_v12 = vadd.f32 %v1672_v16, %v1480_v31  ;;  %v1482_v15 = vadd.f32 %v1481_v0, %v3564_v28 }
 0x17b   :  { %v1483_v60 = vpop.f32.mrf.mxu1  ;;  %v1676_v48 = vpop.f32.mrf.mxu0 }
 0x17c   :  { %3198 = verf.f32 %v1893_v26  ;;  %v1894_v19 = vmul.f32 0.70710677, %v3753_v12  ;;  %v1675_v10 = vadd.f32 %v1674_v21, %v1482_v15  ;;  %v1484_v9 = vadd.f32 %v1483_v60, %v3570_v32  ;;  %v3763_v60 = vpop.permute.xlu1 %2234 }
 0x17d   :  { %v1487_v45 = vpop.f32.mrf.mxu1  ;;  %v1680_v42 = vpop.f32.mrf.mxu0  ;;  %4271 = vst [vmem:[#allocation46_spill] sm:$0xff] %v3763_v60  ;;  %v1829_v60 = vmul.f32 0.5, %v1671_v23 }
 0x17e   :  { %3200 = verf.f32 %v1894_v19  ;;  %v1895_v31 = vmul.f32 0.70710677, %v1675_v10  ;;  %v1488_v28 = vadd.f32 %v1487_v45, %v3576_v36  ;;  %v1677_v0 = vadd.f32 %v1676_v48, %v1484_v9  ;;  %v2520_v9 = vld [vmem:[#allocation10 + $0xc0] sm:$0xff] }
 0x17f   :  { %v1489_v14 = vpop.f32.mrf.mxu1  ;;  %v1682_v16 = vpop.f32.mrf.mxu0  ;;  %v2504_v45 = vld [vmem:[#allocation10 + $0x40] sm:$0xff]  ;;  %2841 = vmatprep.subr.mxu1 %v2520_v9 }
 0x180   :  { %3202 = verf.f32 %v1895_v31  ;;  %v1681_v26 = vadd.f32 %v1680_v42, %v1488_v28  ;;  %v1490_v56 = vadd.f32 %v1489_v14, %v3582_v40  ;;  %v1896_v21 = vmul.f32 0.70710677, %v1677_v0  ;;  %2842 = vmatpush3.msra.mxu1 %v2504_v45 }
 0x181   :  { %v1491_v15 = vpop.f32.mrf.mxu1  ;;  %v1684_v7 = vpop.f32.mrf.mxu0  ;;  %2843 = vmatprep.subr.mxu1 %v2519_v58 }
 0x182   :  { %v1897_v34 = vmul.f32 0.70710677, %v1681_v26  ;;  %v1683_v3 = vadd.f32 %v1682_v16, %v1490_v56  ;;  %v1492_v32 = vadd.f32 %v1491_v15, %v3588_v46  ;;  %3204 = verf.f32 %v1896_v21 }
 0x183   :  { %v1493_v51 = vpop.f32.mrf.mxu1  ;;  %v1686_v19 = vpop.f32.mrf.mxu0 }
 0x184   :  { %3206 = verf.f32 %v1897_v34  ;;  %v1898_v36 = vmul.f32 0.70710677, %v1683_v3  ;;  %v1685_v48 = vadd.f32 %v1684_v7, %v1492_v32  ;;  %v1494_v42 = vadd.f32 %v1493_v51, %v3594_v52  ;;  %v3768_v7 = vpop.permute.xlu1 %2167 }
 0x185   :  { %v1497_v40 = vpop.f32.mrf.mxu1  ;;  %v1690_v31 = vpop.f32.mrf.mxu0 }
 0x186   :  { %3208 = verf.f32 %v1898_v36  ;;  %v1899_v28 = vmul.f32 0.70710677, %v1685_v48  ;;  %v1498_v56 = vadd.f32 %v1497_v40, %v3600_v57  ;;  %v1687_v46 = vadd.f32 %v1686_v19, %v1494_v42  ;;  %v2503_v57 = vld [vmem:[#allocation10 + $0x38] sm:$0xff] }
 0x187   :  { %v1499_v14 = vpop.f32.mrf.mxu1  ;;  %v1692_v16 = vpop.f32.mrf.mxu0  ;;  %v1830_v19 = vmul.f32 0.5, %v3753_v12  ;;  %v1831_v42 = vmul.f32 0.5, %v1675_v10  ;;  %2844 = vmatpush3.msra.mxu1 %v2503_v57  ;;  %v3777_v47 = vmul.f32 0.5, %v1685_v48 }
 0x188   :  { %3210 = verf.f32 %v1899_v28  ;;  %v1691_v21 = vadd.f32 %v1690_v31, %v1498_v56  ;;  %v1500_v15 = vadd.f32 %v1499_v14, %v3606_v61  ;;  %v1900_v32 = vmul.f32 0.70710677, %v1687_v46 }
 0x189   :  { %v3199_v34 = vpop.eup %3198  ;;  %v1501_v52 = vpop.f32.mrf.mxu1  ;;  %v1832_v28 = vmul.f32 0.5, %v1677_v0  ;;  %v1833_v56 = vmul.f32 0.5, %v1681_v26  ;;  %v3772_v14 = vmul.f32 0.5, %v1683_v3  ;;  %v3782_v3 = vmul.f32 0.5, %v1687_v46 }
 0x18a   :  { %v1694_v51 = vpop.f32.mrf.mxu0  ;;  %v2021_v9 = vadd.f32 1.0, %v3199_v34  ;;  %v1901_v36 = vmul.f32 0.70710677, %v1691_v21  ;;  %v1693_v62 = vadd.f32 %v1692_v16, %v1500_v15  ;;  %3212 = verf.f32 %v1900_v32  ;;  %v3780_v0 = vpop.permute.xlu1 %2171 }
 0x18b   :  { %v3201_v45 = vpop.eup %3200  ;;  %v1502_v40 = vadd.f32 %v1501_v52, %v3612_v2  ;;  %v1503_v61 = vpop.f32.mrf.mxu1 }
 0x18c   :  { %v1696_v31 = vpop.f32.mrf.mxu0  ;;  %v2022_v23 = vadd.f32 1.0, %v3201_v45  ;;  %v2085_v16 = vmul.f32 %v2021_v9, %v1829_v60  ;;  %v1902_v15 = vmul.f32 0.70710677, %v1693_v62  ;;  %v1504_v12 = vadd.f32 %v1503_v61, %v3618_v6  ;;  %v2518_v6 = vld [vmem:[#allocation10 + $0xb0] sm:$0xff] }
 0x18d   :  { %v3203_v34 = vpop.eup %3202  ;;  %v3774_v53 = vadd.f32 %v1694_v51, %v1502_v40  ;;  %v1507_v10 = vpop.f32.mrf.mxu1  ;;  %3214 = verf.f32 %v1901_v36  ;;  %v2502_v9 = vld [vmem:[#allocation10 + $0x30] sm:$0xff]  ;;  %2845 = vmatprep.subr.mxu1 %v2518_v6  ;;  %v3791_v61 = vmul.f32 0.5, %v1691_v21 }
 0x18e   :  { %v1700_v32 = vpop.f32.mrf.mxu0  ;;  %v2023_v2 = vadd.f32 1.0, %v3203_v34  ;;  %v1508_v58 = vadd.f32 %v1507_v10, %v3624_v11  ;;  %3216 = verf.f32 %v1902_v15  ;;  %v3785_v60 = vadd.f32 %v1696_v31, %v1504_v12  ;;  %2846 = vmatpush3.msra.mxu1 %v2502_v9 }
 0x18f   :  { %v1903_v26 = vmul.f32 0.70710677, %v3774_v53  ;;  %v1509_v52 = vpop.f32.mrf.mxu1  ;;  %v3205_v57 = vpop.eup %3204  ;;  %v2086_v48 = vmul.f32 %v2022_v23, %v1830_v19  ;;  %v2284_v46 = vmul.f32 %v3715_v54, %v2085_v16 }
 0x190   :  { %v1702_v51 = vpop.f32.mrf.mxu0  ;;  %v2087_v45 = vmul.f32 %v2023_v2, %v1831_v42  ;;  %v3787_v36 = vadd.f32 %v1700_v32, %v1508_v58  ;;  %v1510_v11 = vadd.f32 %v1509_v52, %v3630_v18  ;;  %v2024_v34 = vadd.f32 1.0, %v3205_v57  ;;  %v3800_v57 = vpop.permute.xlu1 %2175 }
 0x191   :  { %v3207_v40 = vpop.eup %3206  ;;  %v1904_v31 = vmul.f32 0.70710677, %v3785_v60  ;;  %v1511_v15 = vpop.f32.mrf.mxu1  ;;  %3218 = verf.f32 %v1903_v26  ;;  %v2285_v58 = vmul.f32 %v3715_v54, %v2086_v48  ;;  %v3798_v52 = vmul.f32 0.5, %v1693_v62 }
 0x192   :  { %v1704_v12 = vpop.f32.mrf.mxu0  ;;  %v2286_v10 = vmul.f32 %v3735_v55, %v2087_v45  ;;  %v1905_v19 = vmul.f32 0.70710677, %v3787_v36  ;;  %v1703_v42 = vadd.f32 %v1702_v51, %v1510_v11  ;;  %v2088_v18 = vmul.f32 %v2024_v34, %v1832_v28 }
 0x193   :  { %v3209_v23 = vpop.eup %3208  ;;  %3220 = verf.f32 %v1904_v31  ;;  %v2025_v32 = vadd.f32 1.0, %v3207_v40  ;;  %v1512_v16 = vadd.f32 %v1511_v15, %v3636_v24  ;;  %v1513_v21 = vpop.f32.mrf.mxu1 }
 0x194   :  { %v1706_v2 = vpop.f32.mrf.mxu0  ;;  %v2348_v6 = vadd.f32 %v2286_v10, %v2284_v46  ;;  %v1906_v9 = vmul.f32 0.70710677, %v1703_v42  ;;  %v2287_v45 = vmul.f32 %v3735_v55, %v2088_v18  ;;  %v2026_v51 = vadd.f32 1.0, %v3209_v23  ;;  %v2501_v18 = vld [vmem:[#allocation10 + $0x28] sm:$0xff] }
 0x195   :  { %v3211_v26 = vpop.eup %3210  ;;  %v2089_v11 = vmul.f32 %v2025_v32, %v1833_v56  ;;  %v1705_v28 = vadd.f32 %v1704_v12, %v1512_v16  ;;  %v1517_v34 = vpop.f32.mrf.mxu1  ;;  %3222 = verf.f32 %v1905_v19  ;;  %v1514_v24 = vadd.f32 %v1513_v21, %v3642_v30  ;;  %v2517_v30 = vld [vmem:[#allocation10 + $0xa8] sm:$0xff] }
 0x196   :  { %v1710_v40 = vpop.f32.mrf.mxu0  ;;  %v1518_v31 = vadd.f32 %v1517_v34, %v3648_v38  ;;  %v2027_v54 = vadd.f32 1.0, %v3211_v26  ;;  %v2369_v62 = vadd.f32 %v2287_v45, %v2285_v58  ;;  %3224 = verf.f32 %v1906_v9  ;;  %2847 = vmatprep.subr.mxu1 %v2517_v30  ;;  %v3817_v45 = vpop.permute.xlu1 %2179 }
 0x197   :  { %v2090_v48 = vmul.f32 %v2026_v51, %v3772_v14  ;;  %v2288_v46 = vmul.f32 %v3757_v39, %v2089_v11  ;;  %v1519_v15 = vpop.f32.mrf.mxu1  ;;  %v3213_v55 = vpop.eup %3212  ;;  %v1907_v23 = vmul.f32 0.70710677, %v1705_v28  ;;  %v3807_v56 = vadd.f32 %v1706_v2, %v1514_v24  ;;  %2848 = vmatpush3.msra.mxu1 %v2501_v18 }
 0x198   :  { %v1712_v10 = vpop.f32.mrf.mxu0  ;;  %v3809_v12 = vadd.f32 %v1710_v40, %v1518_v31  ;;  %v1520_v19 = vadd.f32 %v1519_v15, %v3654_v44  ;;  %v2028_v16 = vadd.f32 1.0, %v3213_v55  ;;  %v2091_v14 = vmul.f32 %v2027_v54, %v3777_v47 }
 0x199   :  { %v2289_v38 = vmul.f32 %v3757_v39, %v2090_v48  ;;  %v2349_v32 = vadd.f32 %v2348_v6, %v2288_v46  ;;  %v1521_v21 = vpop.f32.mrf.mxu1  ;;  %v1839_v9 = vmul.f32 0.5, %v3774_v53  ;;  %v1840_v2 = vmul.f32 0.5, %v3785_v60 }
 0x19a   :  { %v1714_v58 = vpop.f32.mrf.mxu0  ;;  %3226 = verf.f32 %v1907_v23  ;;  %v1908_v26 = vmul.f32 0.70710677, %v3807_v56  ;;  %v3215_v44 = vpop.eup %3214  ;;  %v1909_v39 = vmul.f32 0.70710677, %v3809_v12  ;;  %v1713_v6 = vadd.f32 %v1712_v10, %v1520_v19 }
 0x19b   :  { %v2370_v51 = vadd.f32 %v2369_v62, %v2289_v38  ;;  %v2092_v47 = vmul.f32 %v2028_v16, %v3782_v3  ;;  %v1523_v11 = vpop.f32.mrf.mxu1  ;;  %v3217_v40 = vpop.eup %3216  ;;  %v2290_v53 = vmul.f32 %v3768_v7, %v2091_v14  ;;  %v1522_v60 = vadd.f32 %v1521_v21, %v3660_v50 }
 0x19c   :  { %v1716_v34 = vpop.f32.mrf.mxu0  ;;  %3228 = verf.f32 %v1908_v26  ;;  %v1524_v24 = vadd.f32 %v1523_v11, %v3666_v59  ;;  %v3825_v31 = vmul.f32 0.5, %v3787_v36  ;;  %v3827_v54 = vmul.f32 0.5, %v1703_v42 }
 0x19d   :  { %v1910_v62 = vmul.f32 0.70710677, %v1713_v6  ;;  %v2291_v48 = vmul.f32 %v3768_v7, %v2092_v47  ;;  %v1527_v46 = vpop.f32.mrf.mxu1  ;;  %v2350_v15 = vadd.f32 %v2349_v32, %v2290_v53  ;;  %v1715_v10 = vadd.f32 %v1714_v58, %v1522_v60  ;;  %v3836_v32 = vpop.permute.xlu1 %2183 }
 0x19e   :  { %v1720_v3 = vpop.f32.mrf.mxu0  ;;  %v3830_v55 = vadd.f32 %v1716_v34, %v1524_v24  ;;  %v2029_v23 = vadd.f32 1.0, %v3215_v44  ;;  %v3219_v19 = vpop.eup %3218  ;;  %3230 = verf.f32 %v1909_v39  ;;  %v2030_v30 = vadd.f32 1.0, %v3217_v40 }
 0x19f   :  { %v2371_v50 = vadd.f32 %v2370_v51, %v2291_v48  ;;  %v1528_v59 = vadd.f32 %v1527_v46, %v3672_v4  ;;  %v1529_v36 = vpop.f32.mrf.mxu1  ;;  %v3833_v38 = vmul.f32 0.5, %v1705_v28  ;;  %3232 = verf.f32 %v1910_v62 }
 0x1a0   :  { %v1722_v18 = vpop.f32.mrf.mxu0  ;;  %v3221_v42 = vpop.eup %3220  ;;  %v1911_v7 = vmul.f32 0.70710677, %v1715_v10  ;;  %v1912_v16 = vmul.f32 0.70710677, %v3830_v55  ;;  %v2093_v14 = vmul.f32 %v2029_v23, %v3791_v61  ;;  %v2094_v21 = vmul.f32 %v2030_v30, %v3798_v52 }
 0x1a1   :  { %v3840_v58 = vadd.f32 %v1720_v3, %v1528_v59  ;;  %v1530_v26 = vadd.f32 %v1529_v36, %v3678_v17  ;;  %v1531_v4 = vpop.f32.mrf.mxu1  ;;  %v2031_v51 = vadd.f32 1.0, %v3219_v19  ;;  %v2032_v28 = vadd.f32 1.0, %v3221_v42  ;;  %v3862_v36 = vpop.permute.xlu1 %2187 }
 0x1a2   :  { %v1724_v44 = vpop.f32.mrf.mxu0  ;;  %3234 = verf.f32 %v1911_v7  ;;  %v1532_v39 = vadd.f32 %v1531_v4, %v3684_v35  ;;  %v3223_v47 = vpop.eup %3222  ;;  %v3845_v11 = vmul.f32 0.5, %v3807_v56  ;;  %v2292_v61 = vmul.f32 %v3780_v0, %v2093_v14 }
 0x1a3   :  { %3236 = verf.f32 %v1912_v16  ;;  %v2293_v52 = vmul.f32 %v3780_v0, %v2094_v21  ;;  %v1533_v34 = vpop.f32.mrf.mxu1  ;;  %v3225_v53 = vpop.eup %3224  ;;  %v1913_v17 = vmul.f32 0.70710677, %v3840_v58  ;;  %v3850_v60 = vadd.f32 %v1722_v18, %v1530_v26 }
 0x1a4   :  { %v1726_v40 = vpop.f32.mrf.mxu0  ;;  %v2095_v24 = vmul.f32 %v2031_v51, %v1839_v9  ;;  %v2096_v62 = vmul.f32 %v2032_v28, %v1840_v2  ;;  %v2351_v48 = vadd.f32 %v2350_v15, %v2292_v61  ;;  %v3852_v46 = vadd.f32 %v1724_v44, %v1532_v39  ;;  %v2516_v39 = vld [vmem:[#allocation10 + $0xa0] sm:$0xff]  ;;  %v2515_v61 = vld [vmem:[#allocation10 + $0x98] sm:$0xff] }
 0x1a5   :  { %v2372_v35 = vadd.f32 %v2371_v50, %v2293_v52  ;;  %v1534_v56 = vadd.f32 %v1533_v34, %v3690_v49  ;;  %v1537_v3 = vpop.f32.mrf.mxu1  ;;  %v3856_v19 = vmul.f32 0.5, %v3809_v12  ;;  %v3858_v0 = vmul.f32 0.5, %v1713_v6  ;;  %2849 = vmatprep.subr.mxu1 %v2516_v39 }
 0x1a6   :  { %v1730_v23 = vpop.f32.mrf.mxu0  ;;  %v1914_v30 = vmul.f32 0.70710677, %v3850_v60  ;;  %v2294_v59 = vmul.f32 %v3800_v57, %v2095_v24  ;;  %3238 = verf.f32 %v1913_v17  ;;  %v2295_v2 = vmul.f32 %v3800_v57, %v2096_v62  ;;  %v2499_v17 = vld [vmem:[#allocation10 + $0x18] sm:$0xff]  ;;  %v3882_v62 = vpop.permute.xlu1 %2191 }
 0x1a7   :  { %v3227_v9 = vpop.eup %3226  ;;  %v1915_v15 = vmul.f32 0.70710677, %v3852_v46  ;;  %v3866_v49 = vadd.f32 %v1726_v40, %v1534_v56  ;;  %v1539_v50 = vpop.f32.mrf.mxu1  ;;  %v2033_v6 = vadd.f32 1.0, %v3223_v47  ;;  %v2034_v42 = vadd.f32 1.0, %v3225_v53  ;;  %v2500_v47 = vld [vmem:[#allocation10 + $0x20] sm:$0xff] }
 0x1a8   :  { %v1732_v18 = vpop.f32.mrf.mxu0  ;;  %3240 = verf.f32 %v1914_v30  ;;  %v2352_v12 = vadd.f32 %v2351_v48, %v2294_v59  ;;  %v3868_v16 = vmul.f32 0.5, %v1715_v10  ;;  %v2373_v14 = vadd.f32 %v2372_v35, %v2295_v2  ;;  %2850 = vmatpush3.msra.mxu1 %v2500_v47  ;;  %v2514_v48 = vld [vmem:[#allocation10 + $0x90] sm:$0xff] }
 0x1a9   :  { %v3229_v7 = vpop.eup %3228  ;;  %3242 = verf.f32 %v1915_v15  ;;  %v1916_v21 = vmul.f32 0.70710677, %v3866_v49  ;;  %v1541_v26 = vpop.f32.mrf.mxu1  ;;  %v2097_v57 = vmul.f32 %v2033_v6, %v3825_v31  ;;  %v2098_v44 = vmul.f32 %v2034_v42, %v3827_v54  ;;  %2851 = vmatprep.subr.mxu1 %v2515_v61 }
 0x1aa   :  { %v1734_v4 = vpop.f32.mrf.mxu0  ;;  %v1538_v51 = vadd.f32 %v1537_v3, %v3698_v8  ;;  %v1540_v28 = vadd.f32 %v1539_v50, %v3704_v27  ;;  %v2035_v10 = vadd.f32 1.0, %v3227_v9  ;;  %v2036_v52 = vadd.f32 1.0, %v3229_v7  ;;  %2852 = vmatpush3.msra.mxu1 %v2499_v17  ;;  %v3907_v47 = vpop.permute.xlu1 %2195 }
 0x1ab   :  { %3244 = verf.f32 %v1916_v21  ;;  %v1542_v34 = vadd.f32 %v1541_v26, %v3710_v63  ;;  %v1543_v40 = vpop.f32.mrf.mxu1  ;;  %v3231_v24 = vpop.eup %3230  ;;  %v2296_v31 = vmul.f32 %v3817_v45, %v2097_v57  ;;  %v2297_v54 = vmul.f32 %v3817_v45, %v2098_v44  ;;  %v2498_v45 = vld [vmem:[#allocation10 + $0x10] sm:$0xff]  ;;  %2853 = vmatprep.subr.mxu1 %v2514_v48 }
 0x1ac   :  { %v1736_v53 = vpop.f32.mrf.mxu0  ;;  %v3878_v8 = vadd.f32 %v1730_v23, %v1538_v51  ;;  %v3880_v27 = vadd.f32 %v1732_v18, %v1540_v28  ;;  %v3233_v35 = vpop.eup %3232  ;;  %v2099_v63 = vmul.f32 %v2035_v10, %v3833_v38  ;;  %v2100_v56 = vmul.f32 %v2036_v52, %v3845_v11  ;;  %v2513_v18 = vld [vmem:[#allocation10 + $0x88] sm:$0xff]  ;;  %2854 = vmatpush3.msra.mxu1 %v2498_v45 }
 0x1ad   :  { %v3886_v3 = vadd.f32 %v1734_v4, %v1542_v34  ;;  %v1544_v30 = vadd.f32 %v1543_v40, %v3718_v22  ;;  %v1547_v59 = vpop.f32.mrf.mxu1  ;;  %v1848_v23 = vmul.f32 0.5, %v3830_v55  ;;  %v2353_v2 = vadd.f32 %v2352_v12, %v2296_v31  ;;  %v2497_v55 = vld [vmem:[#allocation10 + $0x8] sm:$0xff]  ;;  %2855 = vmatprep.subr.mxu1 %v2513_v18 }
 0x1ae   :  { %v1740_v9 = vpop.f32.mrf.mxu0  ;;  %v2374_v15 = vadd.f32 %v2373_v14, %v2297_v54  ;;  %v1917_v50 = vmul.f32 0.70710677, %v3878_v8  ;;  %v3892_v38 = vmul.f32 0.5, %v3840_v58  ;;  %v1918_v11 = vmul.f32 0.70710677, %v3880_v27  ;;  %2856 = vmatpush3.msra.mxu1 %v2497_v55 }
 0x1af   :  { %v3235_v6 = vpop.eup %3234  ;;  %v2298_v22 = vmul.f32 %v3836_v32, %v2099_v63  ;;  %v2299_v42 = vmul.f32 %v3836_v32, %v2100_v56  ;;  %v1549_v7 = vpop.f32.mrf.mxu1  ;;  %v3898_v14 = vmul.f32 0.5, %v3850_v60  ;;  %v1919_v26 = vmul.f32 0.70710677, %v3886_v3 }
 0x1b0   :  { %v1742_v21 = vpop.f32.mrf.mxu0  ;;  %v3237_v12 = vpop.eup %3236  ;;  %3246 = verf.f32 %v1917_v50  ;;  %v3901_v4 = vadd.f32 %v1736_v53, %v1544_v30  ;;  %v2037_v44 = vadd.f32 1.0, %v3231_v24  ;;  %v3904_v28 = vmul.f32 0.5, %v3852_v46 }
 0x1b1   :  { %3248 = verf.f32 %v1918_v11  ;;  %v2354_v58 = vadd.f32 %v2353_v2, %v2298_v22  ;;  %v2375_v57 = vadd.f32 %v2374_v15, %v2299_v42  ;;  %v1551_v51 = vpop.f32.mrf.mxu1  ;;  %v2038_v39 = vadd.f32 1.0, %v3233_v35  ;;  %v2200_v22 = vpop.permute.xlu1 %2199 }
 0x1b2   :  { %v1744_v32 = vpop.f32.mrf.mxu0  ;;  %3250 = verf.f32 %v1919_v26  ;;  %v1920_v60 = vmul.f32 0.70710677, %v3901_v4  ;;  %v2101_v61 = vmul.f32 %v2037_v44, %v3856_v19  ;;  %v1548_v10 = vadd.f32 %v1547_v59, %v3724_v43 }
 0x1b3   :  { %v1550_v52 = vadd.f32 %v1549_v7, %v3730_v5  ;;  %v2039_v34 = vadd.f32 1.0, %v3235_v6  ;;  %v1553_v40 = vpop.f32.mrf.mxu1  ;;  %v3239_v17 = vpop.eup %3238  ;;  %v2102_v46 = vmul.f32 %v2038_v39, %v3858_v0  ;;  %v2040_v24 = vadd.f32 1.0, %v3237_v12 }
 0x1b4   :  { %v1746_v53 = vpop.f32.mrf.mxu0  ;;  %3252 = verf.f32 %v1920_v60  ;;  %v1552_v31 = vadd.f32 %v1551_v51, %v3738_v13  ;;  %v2300_v48 = vmul.f32 %v3862_v36, %v2101_v61  ;;  %v1741_v35 = vadd.f32 %v1740_v9, %v1548_v10 }
 0x1b5   :  { %v3241_v54 = vpop.eup %3240  ;;  %v3915_v63 = vadd.f32 %v1742_v21, %v1550_v52  ;;  %v2103_v43 = vmul.f32 %v2039_v34, %v3868_v16  ;;  %v1557_v19 = vpop.f32.mrf.mxu1  ;;  %v2301_v30 = vmul.f32 %v3862_v36, %v2102_v46  ;;  %v2104_v59 = vmul.f32 %v2040_v24, %v1848_v23 }
 0x1b6   :  { %v1750_v5 = vpop.f32.mrf.mxu0  ;;  %v3243_v56 = vpop.eup %3242  ;;  %v3919_v45 = vadd.f32 %v1744_v32, %v1552_v31  ;;  %v1554_v0 = vadd.f32 %v1553_v40, %v3744_v1  ;;  %v1852_v13 = vmul.f32 0.5, %v3866_v49  ;;  %v3924_v2 = vmul.f32 0.5, %v3878_v8 }
 0x1b7   :  { %v2355_v9 = vadd.f32 %v2354_v58, %v2300_v48  ;;  %v1921_v15 = vmul.f32 0.70710677, %v1741_v35  ;;  %v1559_v50 = vpop.f32.mrf.mxu1  ;;  %v2376_v6 = vadd.f32 %v2375_v57, %v2301_v30  ;;  %v1922_v11 = vmul.f32 0.70710677, %v3915_v63  ;;  %v2512_v30 = vld [vmem:[#allocation10 + $0x80] sm:$0xff] }
 0x1b8   :  { %v1752_v18 = vpop.f32.mrf.mxu0  ;;  %v3245_v16 = vpop.eup %3244  ;;  %v2302_v36 = vmul.f32 %v3882_v62, %v2103_v43  ;;  %v2303_v23 = vmul.f32 %v3882_v62, %v2104_v59  ;;  %v3930_v1 = vmul.f32 0.5, %v3880_v27  ;;  %v1923_v49 = vmul.f32 0.70710677, %v3919_v45  ;;  %2857 = vmatprep.subr.mxu1 %v2512_v30 }
 0x1b9   :  { %3254 = verf.f32 %v1921_v15  ;;  %v3933_v8 = vadd.f32 %v1746_v53, %v1554_v0  ;;  %v1561_v42 = vpop.f32.mrf.mxu1  ;;  %v2041_v12 = vadd.f32 1.0, %v3239_v17  ;;  %v3936_v26 = vmul.f32 0.5, %v3886_v3 }
 0x1ba   :  { %v1754_v7 = vpop.f32.mrf.mxu0  ;;  %3256 = verf.f32 %v1922_v11  ;;  %v2356_v21 = vadd.f32 %v2355_v9, %v2302_v36  ;;  %v2377_v55 = vadd.f32 %v2376_v6, %v2303_v23  ;;  %v2042_v58 = vadd.f32 1.0, %v3241_v54 }
 0x1bb   :  { %3258 = verf.f32 %v1923_v49  ;;  %v1924_v62 = vmul.f32 0.70710677, %v3933_v8  ;;  %v1563_v27 = vpop.f32.mrf.mxu1  ;;  %v2105_v44 = vmul.f32 %v2041_v12, %v3892_v38  ;;  %v1558_v51 = vadd.f32 %v1557_v19, %v3554_v20 }
 0x1bc   :  { %v1756_v57 = vpop.f32.mrf.mxu0  ;;  %v1560_v32 = vadd.f32 %v1559_v50, %v3560_v25  ;;  %v2043_v60 = vadd.f32 1.0, %v3243_v56  ;;  %v2106_v61 = vmul.f32 %v2042_v58, %v3898_v14  ;;  %v2044_v10 = vadd.f32 1.0, %v3245_v16  ;;  %v2204_v25 = vpop.permute.xlu1 %2203 }
 0x1bd   :  { %v3247_v39 = vpop.eup %3246  ;;  %3260 = verf.f32 %v1924_v62  ;;  %v1562_v3 = vadd.f32 %v1561_v42, %v3567_v29  ;;  %v1567_v52 = vpop.f32.mrf.mxu1  ;;  %v2304_v53 = vmul.f32 %v3907_v47, %v2105_v44  ;;  %v3945_v17 = vadd.f32 %v1750_v5, %v1558_v51 }
 0x1be   :  { %v1760_v34 = vpop.f32.mrf.mxu0  ;;  %v3249_v40 = vpop.eup %3248  ;;  %v3947_v38 = vadd.f32 %v1752_v18, %v1560_v32  ;;  %v2107_v20 = vmul.f32 %v2043_v60, %v3904_v28  ;;  %v2305_v24 = vmul.f32 %v3907_v47, %v2106_v61  ;;  %v2108_v31 = vmul.f32 %v2044_v10, %v1852_v13  ;;  %v2496_v28 = vld [vmem:[#allocation10] sm:$0xff] }
 0x1bf   :  { %v3251_v46 = vpop.eup %3250  ;;  %v3951_v14 = vadd.f32 %v1754_v7, %v1562_v3  ;;  %v1564_v29 = vadd.f32 %v1563_v27, %v3573_v33  ;;  %v1569_v54 = vpop.f32.mrf.mxu1  ;;  %v1856_v43 = vmul.f32 0.5, %v3901_v4  ;;  %v3955_v19 = vmul.f32 0.5, %v1741_v35  ;;  %2858 = vmatpush3.msra.mxu1 %v2496_v28 }
 0x1c0   :  { %v1762_v48 = vpop.f32.mrf.mxu0  ;;  %v2357_v5 = vadd.f32 %v2356_v21, %v2304_v53  ;;  %v1925_v56 = vmul.f32 0.70710677, %v3945_v17  ;;  %v2378_v0 = vadd.f32 %v2377_v55, %v2305_v24  ;;  %v1926_v47 = vmul.f32 0.70710677, %v3947_v38  ;;  %v2208_v49 = vpop.permute.xlu1 %2207 }
 0x1c1   :  { %v3253_v59 = vpop.eup %3252  ;;  %v2306_v13 = vmul.f32 %v2200_v22, %v2107_v20  ;;  %v2307_v9 = vmul.f32 %v2200_v22, %v2108_v31  ;;  %v1571_v15 = vpop.f32.mrf.mxu1  ;;  %v3960_v33 = vmul.f32 0.5, %v3915_v63  ;;  %v1927_v4 = vmul.f32 0.70710677, %v3951_v14 }
 0x1c2   :  { %v1764_v50 = vpop.f32.mrf.mxu0  ;;  %3262 = verf.f32 %v1925_v56  ;;  %v3963_v35 = vadd.f32 %v1756_v57, %v1564_v29  ;;  %v2045_v6 = vadd.f32 1.0, %v3247_v39  ;;  %v3966_v23 = vmul.f32 0.5, %v3919_v45  ;;  %v4272_v57 = vld [vmem:[#allocation18_spill] sm:$0xff] }
 0x1c3   :  { %3264 = verf.f32 %v1926_v47  ;;  %v2358_v18 = vadd.f32 %v2357_v5, %v2306_v13  ;;  %v2379_v16 = vadd.f32 %v2378_v0, %v2307_v9  ;;  %v1573_v11 = vpop.f32.mrf.mxu1  ;;  %v2046_v63 = vadd.f32 1.0, %v3249_v40  ;;  %v4273_v40 = vld [vmem:[#allocation19_spill] sm:$0xff] }
 0x1c4   :  { %v1766_v36 = vpop.f32.mrf.mxu0  ;;  %3266 = verf.f32 %v1927_v4  ;;  %v1928_v22 = vmul.f32 0.70710677, %v3963_v35  ;;  %v2109_v42 = vmul.f32 %v2045_v6, %v3924_v2  ;;  %v1568_v7 = vadd.f32 %v1567_v52, %v3579_v37  ;;  %v4274_v4 = vld [vmem:[#allocation20_spill] sm:$0xff] }
 0x1c5   :  { %v1570_v21 = vadd.f32 %v1569_v54, %v3585_v41  ;;  %v2047_v55 = vadd.f32 1.0, %v3251_v46  ;;  %v1577_v12 = vpop.f32.mrf.mxu1  ;;  %v2110_v27 = vmul.f32 %v2046_v63, %v3930_v1  ;;  %v2048_v45 = vadd.f32 1.0, %v3253_v59  ;;  %v4276_v63 = vld [vmem:[#allocation22_spill] sm:$0xff] }
 0x1c6   :  { %v1770_v62 = vpop.f32.mrf.mxu0  ;;  %v3255_v58 = vpop.eup %3254  ;;  %3268 = verf.f32 %v1928_v22  ;;  %v1572_v44 = vadd.f32 %v1571_v15, %v4272_v57  ;;  %v2308_v32 = vmul.f32 %v2204_v25, %v2109_v42  ;;  %v3974_v60 = vadd.f32 %v1760_v34, %v1568_v7 }
 0x1c7   :  { %v3257_v51 = vpop.eup %3256  ;;  %v3976_v39 = vadd.f32 %v1762_v48, %v1570_v21  ;;  %v2111_v37 = vmul.f32 %v2047_v55, %v3936_v26  ;;  %v1579_v2 = vpop.f32.mrf.mxu1  ;;  %v2309_v10 = vmul.f32 %v2204_v25, %v2110_v27  ;;  %v2112_v3 = vmul.f32 %v2048_v45, %v1856_v43 }
 0x1c8   :  { %v1772_v41 = vpop.f32.mrf.mxu0  ;;  %v3259_v61 = vpop.eup %3258  ;;  %v3979_v52 = vadd.f32 %v1764_v50, %v1572_v44  ;;  %v1574_v1 = vadd.f32 %v1573_v11, %v4273_v40  ;;  %v1860_v53 = vmul.f32 0.5, %v3933_v8  ;;  %v3984_v20 = vmul.f32 0.5, %v3945_v17 }
 0x1c9   :  { %v2359_v34 = vadd.f32 %v2358_v18, %v2308_v32  ;;  %v1929_v46 = vmul.f32 0.70710677, %v3974_v60  ;;  %v1581_v24 = vpop.f32.mrf.mxu1  ;;  %v2380_v29 = vadd.f32 %v2379_v16, %v2309_v10  ;;  %v1930_v54 = vmul.f32 0.70710677, %v3976_v39  ;;  %v2212_v43 = vpop.permute.xlu1 %2211  ;;  %v4275_v16 = vld [vmem:[#allocation21_spill] sm:$0xff]  ;;  %v4277_v10 = vld [vmem:[#allocation23_spill] sm:$0xff] }
 0x1ca   :  { %v1774_v31 = vpop.f32.mrf.mxu0  ;;  %v3261_v26 = vpop.eup %3260  ;;  %v2310_v25 = vmul.f32 %v2208_v49, %v2111_v37  ;;  %v2311_v48 = vmul.f32 %v2208_v49, %v2112_v3  ;;  %v3989_v5 = vmul.f32 0.5, %v3947_v38  ;;  %v1931_v8 = vmul.f32 0.70710677, %v3979_v52 }
 0x1cb   :  { %3270 = verf.f32 %v1929_v46  ;;  %v3992_v17 = vadd.f32 %v1766_v36, %v1574_v1  ;;  %v1583_v56 = vpop.f32.mrf.mxu1  ;;  %v2049_v0 = vadd.f32 1.0, %v3255_v58  ;;  %v1863_v47 = vmul.f32 0.5, %v3951_v14  ;;  %v2223_v45 = vpop.permute.xlu0 %2222 }
 0x1cc   :  { %v1776_v30 = vpop.f32.mrf.mxu0  ;;  %3272 = verf.f32 %v1930_v54  ;;  %v2360_v28 = vadd.f32 %v2359_v34, %v2310_v25  ;;  %v2381_v59 = vadd.f32 %v2380_v29, %v2311_v48  ;;  %v2050_v9 = vadd.f32 1.0, %v3257_v51 }
 0x1cd   :  { %3274 = verf.f32 %v1931_v8  ;;  %v1932_v13 = vmul.f32 0.70710677, %v3992_v17  ;;  %v3996_v15 = vpop.f32.mrf.mxu1  ;;  %v2113_v50 = vmul.f32 %v2049_v0, %v3955_v19  ;;  %v1578_v18 = vadd.f32 %v1577_v12, %v4274_v4  ;;  %v2216_v12 = vpop.permute.xlu1 %2215 }
 0x1ce   :  { %v3998_v38 = vpop.f32.mrf.mxu0  ;;  %v1580_v6 = vadd.f32 %v1579_v2, %v4275_v16  ;;  %v2051_v11 = vadd.f32 1.0, %v3259_v61  ;;  %v2114_v22 = vmul.f32 %v2050_v9, %v3960_v33  ;;  %v2052_v14 = vadd.f32 1.0, %v3261_v26 }
 0x1cf   :  { %v3263_v36 = vpop.eup %3262  ;;  %3276 = verf.f32 %v1932_v13  ;;  %v1582_v49 = vadd.f32 %v1581_v24, %v4276_v63  ;;  %v4005_v42 = vpop.f32.mrf.mxu1  ;;  %v2312_v55 = vmul.f32 %v2212_v43, %v2113_v50  ;;  %v4009_v58 = vadd.f32 %v1770_v62, %v1578_v18 }
 0x1d0   :  { %v4007_v7 = vpop.f32.mrf.mxu0  ;;  %v3265_v21 = vpop.eup %3264  ;;  %v4011_v19 = vadd.f32 %v1772_v41, %v1580_v6  ;;  %v2115_v27 = vmul.f32 %v2051_v11, %v3966_v23  ;;  %v1864_v33 = vmul.f32 0.5, %v3963_v35  ;;  %v2313_v44 = vmul.f32 %v2212_v43, %v2114_v22  ;;  %v4278_v6 = vld [vmem:[#allocation36_spill] sm:$0xff] }
 0x1d1   :  { %v3267_v57 = vpop.eup %3266  ;;  %v2116_v51 = vmul.f32 %v2052_v14, %v1860_v53  ;;  %v4015_v32 = vadd.f32 %v1774_v31, %v1582_v49  ;;  %v4017_v37 = vpop.f32.mrf.mxu1  ;;  %v2361_v62 = vadd.f32 %v2360_v28, %v2312_v55  ;;  %v1933_v41 = vmul.f32 0.70710677, %v4009_v58 }
 0x1d2   :  { %v4019_v2 = vpop.f32.mrf.mxu0  ;;  %v2055_v61 = vadd.f32 1.0, %v3267_v57  ;;  %v1584_v3 = vadd.f32 %v1583_v56, %v4277_v10  ;;  %v1865_v23 = vmul.f32 0.5, %v3974_v60  ;;  %v2382_v1 = vadd.f32 %v2381_v59, %v2313_v44  ;;  %v4029_v29 = vpop.permute.xlu0 %2238 }
 0x1d3   :  { %v3269_v40 = vpop.eup %3268  ;;  %v1934_v35 = vmul.f32 0.70710677, %v4011_v19  ;;  %v2314_v34 = vmul.f32 %v2216_v12, %v2115_v27  ;;  %v4025_v53 = vpop.f32.mrf.mxu1  ;;  %3278 = verf.f32 %v1933_v41  ;;  %v2315_v26 = vmul.f32 %v2216_v12, %v2116_v51 }
 0x1d4   :  { %v4027_v46 = vpop.f32.mrf.mxu0  ;;  %v2119_v24 = vmul.f32 %v2055_v61, %v1863_v47  ;;  %v2056_v31 = vadd.f32 1.0, %v3269_v40  ;;  %v1866_v54 = vmul.f32 0.5, %v3976_v39  ;;  %v1935_v60 = vmul.f32 0.70710677, %v4015_v32  ;;  %v4279_v40 = vld [vmem:[#allocation24_spill] sm:$0xff] }
 0x1d5   :  { %3280 = verf.f32 %v1934_v35  ;;  %v2362_v25 = vadd.f32 %v2361_v62, %v2314_v34  ;;  %v4033_v48 = vpop.f32.mrf.mxu1  ;;  %v2383_v56 = vadd.f32 %v2382_v1, %v2315_v26  ;;  %v4037_v28 = vadd.f32 %v1776_v30, %v1584_v3  ;;  %v4280_v35 = vld [vmem:[#allocation45_spill] sm:$0xff] }
 0x1d6   :  { %v4035_v43 = vpop.f32.mrf.mxu0  ;;  %v2120_v8 = vmul.f32 %v2056_v31, %v1864_v33  ;;  %v2053_v59 = vadd.f32 1.0, %v3263_v36  ;;  %v1867_v0 = vmul.f32 0.5, %v3979_v52  ;;  %3282 = verf.f32 %v1935_v60  ;;  %v4051_v57 = vpop.permute.xlu0 %2242 }
 0x1d7   :  { %v2363_v47 = vrot.slane %v2362_v25, 4  ;;  %v2054_v13 = vadd.f32 1.0, %v3265_v21  ;;  %v4040_v9 = vpop.f32.mrf.mxu1  ;;  %v2384_v4 = vrot.slane %v2383_v56, 4  ;;  %v1936_v18 = vmul.f32 0.70710677, %v4037_v28 }
 0x1d8   :  { %v4042_v39 = vpop.f32.mrf.mxu0  ;;  %v3271_v50 = vpop.eup %3270  ;;  %v2117_v16 = vmul.f32 %v2053_v59, %v3984_v20  ;;  %v2318_v11 = vmul.f32 %v4278_v6, %v2119_v24  ;;  %v2319_v14 = vmul.f32 %v4278_v6, %v2120_v8  ;;  %v1588_v1 = vadd.f32 %v3996_v15, %v4279_v40 }
 0x1d9   :  { %v3273_v30 = vpop.eup %3272  ;;  %v2057_v22 = vadd.f32 1.0, %v3271_v50  ;;  %v2364_v36 = vadd.f32 %v2363_v47, %v2362_v25  ;;  %v2118_v52 = vmul.f32 %v2054_v13, %v3989_v5  ;;  %v1601_v63 = vpop.f32.mrf.mxu1  ;;  %v2385_v12 = vadd.f32 %v2384_v4, %v2383_v56 }
 0x1da   :  { %v4049_v49 = vpop.f32.mrf.mxu0  ;;  %v3275_v21 = vpop.eup %3274  ;;  %v2058_v55 = vadd.f32 1.0, %v3273_v30  ;;  %3284 = verf.f32 %v1936_v18  ;;  %v2316_v27 = vmul.f32 %v2223_v45, %v2117_v16  ;;  %v1868_v56 = vmul.f32 0.5, %v3992_v17 }
 0x1db   :  { %v2121_v20 = vmul.f32 %v2057_v22, %v1865_v23  ;;  %v2059_v33 = vadd.f32 1.0, %v3275_v21  ;;  %v2365_v44 = vrot.slane %v2364_v36, 2  ;;  %v2317_v51 = vmul.f32 %v2223_v45, %v2118_v52  ;;  %v1603_v61 = vpop.f32.mrf.mxu1  ;;  %v4070_v6 = vpop.permute.xlu0 %2246 }
 0x1dc   :  { %v4053_v62 = vpop.f32.mrf.mxu0  ;;  %v3277_v5 = vpop.eup %3276  ;;  %v2122_v41 = vmul.f32 %v2058_v55, %v1866_v54  ;;  %v2386_v10 = vrot.slane %v2385_v12, 2  ;;  %v2390_v3 = vadd.f32 %v2318_v11, %v2316_v27  ;;  %v1781_v54 = vadd.f32 %v3998_v38, %v1588_v1  ;;  %v4282_v38 = vld [vmem:[#allocation25_spill] sm:$0xff]  ;;  %v4284_v27 = vld [vmem:[#allocation27_spill] sm:$0xff] }
 0x1dd   :  { %v2320_v34 = vmul.f32 %v4280_v35, %v2121_v20  ;;  %v2123_v24 = vmul.f32 %v2059_v33, %v1867_v0  ;;  %v2060_v31 = vadd.f32 1.0, %v3277_v5  ;;  %v2366_v26 = vadd.f32 %v2365_v44, %v2364_v36  ;;  %v4058_v25 = vpop.f32.mrf.mxu1  ;;  %v4281_v0 = vld [vmem:[#allocation46_spill] sm:$0xff]  ;;  %v4285_v33 = vld [vmem:[#allocation28_spill] sm:$0xff] }
 0x1de   :  { %v4060_v23 = vpop.f32.mrf.mxu0  ;;  %v2321_v45 = vmul.f32 %v4280_v35, %v2122_v41  ;;  %v2387_v60 = vadd.f32 %v2386_v10, %v2385_v12  ;;  %v2411_v8 = vadd.f32 %v2319_v14, %v2317_v51  ;;  %v1937_v16 = vmul.f32 0.70710677, %v1781_v54  ;;  %v4283_v36 = vld [vmem:[#allocation26_spill] sm:$0xff] }
 0x1df   :  { %v2367_v59 = vrot.slane %v2366_v26, 1  ;;  %v2391_v47 = vadd.f32 %v2390_v3, %v2320_v34  ;;  %v4065_v15 = vpop.f32.mrf.mxu1  ;;  %v2322_v50 = vmul.f32 %v4281_v0, %v2123_v24  ;;  %v2124_v30 = vmul.f32 %v2060_v31, %v1868_v56  ;;  %v4287_v41 = vld [vmem:[#allocation30_spill] sm:$0xff] }
 0x1e0   :  { %v4067_v13 = vpop.f32.mrf.mxu0  ;;  %v2388_v4 = vrot.slane %v2387_v60, 1  ;;  %v2412_v18 = vadd.f32 %v2411_v8, %v2321_v45  ;;  %v3279_v11 = vpop.eup %3278  ;;  %v1590_v17 = vadd.f32 %v4005_v42, %v4282_v38  ;;  %v1592_v52 = vadd.f32 %v4017_v37, %v4283_v36  ;;  %v4286_v37 = vld [vmem:[#allocation29_spill] sm:$0xff] }
 0x1e1   :  { %v4072_v22 = vadd.f32 %v2367_v59, %v2366_v26  ;;  %v4078_v14 = vpop.f32.mrf.mxu1  ;;  %3286 = verf.f32 %v1937_v16  ;;  %v1594_v20 = vadd.f32 %v4025_v53, %v4284_v27  ;;  %v1598_v44 = vadd.f32 %v4033_v48, %v4285_v33 }
 0x1e2   :  { %v4080_v21 = vpop.f32.mrf.mxu0  ;;  %v3281_v55 = vpop.eup %3280  ;;  %v4082_v12 = vadd.f32 %v2388_v4, %v2387_v60  ;;  %v1783_v51 = vadd.f32 %v4007_v7, %v1590_v17  ;;  %v4090_v42 = vadd.f32 %v4019_v2, %v1592_v52  ;;  %v1600_v5 = vadd.f32 %v4040_v9, %v4286_v37  ;;  %v4288_v7 = vld [vmem:[#allocation31_spill] sm:$0xff] }
 0x1e3   :  { %v1602_v10 = vadd.f32 %v1601_v63, %v4287_v41  ;;  %v1613_v3 = vpop.f32.mrf.mxu1  ;;  %v3283_v1 = vpop.eup %3282  ;;  %v1787_v35 = vadd.f32 %v4027_v46, %v1594_v20  ;;  %v4101_v48 = vadd.f32 %v4035_v43, %v1598_v44  ;;  %v1604_v2 = vadd.f32 %v1603_v61, %v4288_v7  ;;  %v4291_v41 = vld [vmem:[#allocation34_spill] sm:$0xff] }
 0x1e4   :  { %v4095_v40 = vpop.f32.mrf.mxu0  ;;  %v2436_v53 = vcombine.low %v4072_v22, %v4082_v12  ;;  %v1869_v34 = vmul.f32 0.5, %v4009_v58  ;;  %v1870_v9 = vmul.f32 0.5, %v4011_v19  ;;  %v1938_v24 = vmul.f32 0.70710677, %v1783_v51  ;;  %v4112_v43 = vpop.permute.xlu0 %2250 }
 0x1e5   :  { %v1939_v63 = vmul.f32 0.70710677, %v4090_v42  ;;  %v1617_v31 = vpop.f32.mrf.mxu1  ;;  %v2323_v26 = vmul.f32 %v4281_v0, %v2124_v30  ;;  %v1871_v45 = vmul.f32 0.5, %v4015_v32  ;;  %v1940_v60 = vmul.f32 0.70710677, %v1787_v35 }
 0x1e6   :  { %v1941_v46 = vmul.f32 0.70710677, %v4101_v48  ;;  %v4110_v8 = vpop.f32.mrf.mxu0  ;;  %3288 = verf.f32 %v1938_v24  ;;  %v1793_v58 = vadd.f32 %v4042_v39, %v1600_v5  ;;  %v4116_v19 = vadd.f32 %v4049_v49, %v1602_v10 }
 0x1e7   :  { %v3285_v61 = vpop.eup %3284  ;;  %v4119_v56 = vadd.f32 %v4053_v62, %v1604_v2  ;;  %v1619_v59 = vpop.f32.mrf.mxu1  ;;  %3290 = verf.f32 %v1939_v63  ;;  %v2061_v32 = vadd.f32 1.0, %v3279_v11  ;;  %v2062_v0 = vadd.f32 1.0, %v3281_v55 }
 0x1e8   :  { %v2392_v4 = vadd.f32 %v2391_v47, %v2322_v50  ;;  %v1872_v16 = vmul.f32 0.5, %v4037_v28  ;;  %v1873_v30 = vmul.f32 0.5, %v1781_v54  ;;  %3292 = verf.f32 %v1940_v60  ;;  %v1812_v62 = vpop.f32.mrf.mxu0  ;;  %v4289_v47 = vld [vmem:[#allocation32_spill] sm:$0xff]  ;;  %v4290_v54 = vld [vmem:[#allocation33_spill] sm:$0xff]  ;;  %v4130_v20 = vpop.permute.xlu0 %2254 }
 0x1e9   :  { %v1942_v38 = vmul.f32 0.70710677, %v1793_v58  ;;  %v1621_v17 = vpop.f32.mrf.mxu1  ;;  %v4122_v36 = vmul.f32 0.5, %v1783_v51  ;;  %3294 = verf.f32 %v1941_v46  ;;  %v1943_v39 = vmul.f32 0.70710677, %v4116_v19 }
 0x1ea   :  { %v1944_v49 = vmul.f32 0.70710677, %v4119_v56  ;;  %v2125_v52 = vmul.f32 %v2061_v32, %v1869_v34  ;;  %v2126_v27 = vmul.f32 %v2062_v0, %v1870_v9  ;;  %v2413_v11 = vadd.f32 %v2412_v18, %v2323_v26  ;;  %v1814_v10 = vpop.f32.mrf.mxu0  ;;  %v4292_v9 = vld [vmem:[#allocation35_spill] sm:$0xff]  ;;  %v4294_v32 = vld [vmem:[#allocation38_spill] sm:$0xff] }
 0x1eb   :  { %3296 = verf.f32 %v1942_v38  ;;  %v1608_v28 = vadd.f32 %v4058_v25, %v4289_v47  ;;  %v1610_v50 = vadd.f32 %v4065_v15, %v4290_v54  ;;  %v2063_v55 = vadd.f32 1.0, %v3283_v1  ;;  %v1623_v37 = vpop.f32.mrf.mxu1 }
 0x1ec   :  { %3298 = verf.f32 %v1943_v39  ;;  %v2324_v33 = vmul.f32 %v4029_v29, %v2125_v52  ;;  %v2325_v44 = vmul.f32 %v4029_v29, %v2126_v27  ;;  %v2064_v51 = vadd.f32 1.0, %v3285_v61 }
 0x1ed   :  { %3300 = verf.f32 %v1944_v49  ;;  %v4135_v5 = vadd.f32 %v4060_v23, %v1608_v28  ;;  %v4138_v18 = vadd.f32 %v4067_v13, %v1610_v50  ;;  %v2127_v25 = vmul.f32 %v2063_v55, %v1871_v45  ;;  %v1627_v46 = vpop.f32.mrf.mxu1  ;;  %v4296_v55 = vld [vmem:[#allocation40_spill] sm:$0xff] }
 0x1ee   :  { %v1612_v15 = vadd.f32 %v4078_v14, %v4291_v41  ;;  %v3287_v1 = vpop.eup %3286  ;;  %v2393_v7 = vadd.f32 %v2392_v4, %v2324_v33  ;;  %v2414_v2 = vadd.f32 %v2413_v11, %v2325_v44  ;;  %v2128_v34 = vmul.f32 %v2064_v51, %v1872_v16  ;;  %v1816_v4 = vpop.f32.mrf.mxu0  ;;  %v4295_v11 = vld [vmem:[#allocation39_spill] sm:$0xff] }
 0x1ef   :  { %v1614_v24 = vadd.f32 %v1613_v3, %v4292_v9  ;;  %v1875_v29 = vmul.f32 0.5, %v4090_v42  ;;  %v1876_v63 = vmul.f32 0.5, %v1787_v35  ;;  %v1945_v23 = vmul.f32 0.70710677, %v4135_v5  ;;  %v4293_v42 = vld [vmem:[#allocation37_spill] sm:$0xff]  ;;  %v4157_v16 = vpop.permute.xlu0 %2258 }
 0x1f0   :  { %v1946_v26 = vmul.f32 0.70710677, %v4138_v18  ;;  %v2326_v13 = vmul.f32 %v4051_v57, %v2127_v25  ;;  %v2327_v45 = vmul.f32 %v4051_v57, %v2128_v34  ;;  %v4149_v14 = vadd.f32 %v4080_v21, %v1612_v15  ;;  %v1820_v44 = vpop.f32.mrf.mxu0 }
 0x1f1   :  { %v4152_v60 = vadd.f32 %v4095_v40, %v1614_v24  ;;  %v1877_v3 = vmul.f32 0.5, %v4101_v48  ;;  %v2065_v61 = vadd.f32 1.0, %v3287_v1  ;;  %v1618_v35 = vadd.f32 %v1617_v31, %v4293_v42 }
 0x1f2   :  { %v1620_v0 = vadd.f32 %v1619_v59, %v4294_v32  ;;  %v1878_v38 = vmul.f32 0.5, %v1793_v58  ;;  %3302 = verf.f32 %v1945_v23  ;;  %v2394_v57 = vadd.f32 %v2393_v7, %v2326_v13  ;;  %v1629_v58 = vpop.f32.mrf.mxu1 }
 0x1f3   :  { %v2415_v39 = vadd.f32 %v2414_v2, %v2327_v45  ;;  %v3289_v21 = vpop.eup %3288  ;;  %3304 = verf.f32 %v1946_v26  ;;  %v1947_v40 = vmul.f32 0.70710677, %v4149_v14  ;;  %v1948_v49 = vmul.f32 0.70710677, %v4152_v60  ;;  %v4174_v7 = vpop.permute.xlu0 %2262 }
 0x1f4   :  { %v2129_v52 = vmul.f32 %v2065_v61, %v1873_v30  ;;  %v3291_v48 = vpop.eup %3290  ;;  %v2066_v27 = vadd.f32 1.0, %v3289_v21  ;;  %v4162_v31 = vadd.f32 %v4110_v8, %v1618_v35  ;;  %v4164_v59 = vadd.f32 %v1812_v62, %v1620_v0  ;;  %v1631_v9 = vpop.f32.mrf.mxu1  ;;  %v4297_v0 = vld [vmem:[#allocation41_spill] sm:$0xff] }
 0x1f5   :  { %v1622_v47 = vadd.f32 %v1621_v17, %v4295_v11  ;;  %v3293_v28 = vpop.eup %3292  ;;  %3306 = verf.f32 %v1947_v40  ;;  %v2067_v50 = vadd.f32 1.0, %v3291_v48  ;;  %v1624_v33 = vadd.f32 %v1623_v37, %v4296_v55  ;;  %v1822_v26 = vpop.f32.mrf.mxu0 }
 0x1f6   :  { %v2328_v54 = vmul.f32 %v4070_v6, %v2129_v52  ;;  %v3295_v51 = vpop.eup %3294  ;;  %v1879_v30 = vmul.f32 0.5, %v4116_v19  ;;  %3308 = verf.f32 %v1948_v49  ;;  %v2130_v8 = vmul.f32 %v2066_v27, %v4122_v36 }
 0x1f7   :  { %v1949_v62 = vmul.f32 0.70710677, %v4162_v31  ;;  %v1880_v17 = vmul.f32 0.5, %v4119_v56  ;;  %v1950_v15 = vmul.f32 0.70710677, %v4164_v59  ;;  %v2068_v1 = vadd.f32 1.0, %v3293_v28  ;;  %v1824_v49 = vpop.f32.mrf.mxu0  ;;  %v2267_v52 = vpop.permute.xlu0 %2266 }
 0x1f8   :  { %v3297_v25 = vpop.eup %3296  ;;  %v2395_v41 = vadd.f32 %v2394_v57, %v2328_v54  ;;  %v2329_v37 = vmul.f32 %v4070_v6, %v2130_v8  ;;  %v2131_v34 = vmul.f32 %v2067_v50, %v1875_v29  ;;  %v4177_v19 = vadd.f32 %v1814_v10, %v1622_v47  ;;  %v1633_v57 = vpop.f32.mrf.mxu1  ;;  %v4300_v54 = vld [vmem:[#allocation44_spill] sm:$0xff] }
 0x1f9   :  { %v3299_v2 = vpop.eup %3298  ;;  %3310 = verf.f32 %v1949_v62  ;;  %v2132_v24 = vmul.f32 %v2068_v1, %v1876_v63  ;;  %v4179_v23 = vadd.f32 %v1816_v4, %v1624_v33  ;;  %v2069_v56 = vadd.f32 1.0, %v3295_v51 }
 0x1fa   :  { %v3301_v36 = vpop.eup %3300  ;;  %3312 = verf.f32 %v1950_v15  ;;  %v1881_v13 = vmul.f32 0.5, %v4135_v5  ;;  %v2416_v45 = vadd.f32 %v2415_v39, %v2329_v37  ;;  %v2330_v61 = vmul.f32 %v4112_v43, %v2131_v34  ;;  %v4298_v39 = vld [vmem:[#allocation42_spill] sm:$0xff] }
 0x1fb   :  { %v1951_v42 = vmul.f32 0.70710677, %v4177_v19  ;;  %v1882_v6 = vmul.f32 0.5, %v4138_v18  ;;  %v2331_v10 = vmul.f32 %v4112_v43, %v2132_v24  ;;  %v1952_v29 = vmul.f32 0.70710677, %v4179_v23 }
 0x1fc   :  { %v2070_v35 = vadd.f32 1.0, %v3297_v25  ;;  %v2396_v32 = vadd.f32 %v2395_v41, %v2330_v61  ;;  %v2133_v63 = vmul.f32 %v2069_v56, %v1877_v3  ;;  %v1628_v4 = vadd.f32 %v1627_v46, %v4297_v0  ;;  %v4299_v46 = vld [vmem:[#allocation43_spill] sm:$0xff] }
 0x1fd   :  { %3314 = verf.f32 %v1951_v42  ;;  %v2417_v21 = vadd.f32 %v2416_v45, %v2331_v10  ;;  %v1630_v40 = vadd.f32 %v1629_v58, %v4298_v39  ;;  %v2071_v43 = vadd.f32 1.0, %v3299_v2 }
 0x1fe   :  { %3316 = verf.f32 %v1952_v29  ;;  %v2134_v5 = vmul.f32 %v2070_v35, %v1878_v38  ;;  %v2332_v18 = vmul.f32 %v4130_v20, %v2133_v63  ;;  %v4190_v48 = vadd.f32 %v1820_v44, %v1628_v4 }
 0x1ff   :  { %v2072_v27 = vadd.f32 1.0, %v3301_v36  ;;  %v3303_v11 = vpop.eup %3302  ;;  %v4193_v3 = vadd.f32 %v1822_v26, %v1630_v40  ;;  %v1632_v28 = vadd.f32 %v1631_v9, %v4299_v46  ;;  %v1634_v50 = vadd.f32 %v1633_v57, %v4300_v54 }
 0x200   :  { %v2333_v47 = vmul.f32 %v4130_v20, %v2134_v5  ;;  %v3305_v38 = vpop.eup %3304  ;;  %v1883_v58 = vmul.f32 0.5, %v4149_v14  ;;  %v2397_v55 = vadd.f32 %v2396_v32, %v2332_v18  ;;  %v1953_v33 = vmul.f32 0.70710677, %v4190_v48  ;;  %v1826_v20 = vpop.f32.mrf.mxu0 }
 0x201   :  { %v2135_v51 = vmul.f32 %v2071_v43, %v1879_v30  ;;  %v1884_v44 = vmul.f32 0.5, %v4152_v60  ;;  %v1954_v62 = vmul.f32 0.70710677, %v4193_v3  ;;  %v2136_v25 = vmul.f32 %v2072_v27, %v1880_v17  ;;  %v2271_v60 = vpop.permute.xlu0 %2270 }
 0x202   :  { %v2418_v8 = vadd.f32 %v2417_v21, %v2333_v47  ;;  %v3307_v41 = vpop.eup %3306  ;;  %3318 = verf.f32 %v1953_v33  ;;  %v4202_v1 = vadd.f32 %v1824_v49, %v1632_v28  ;;  %v4204_v2 = vadd.f32 %v1826_v20, %v1634_v50 }
 0x203   :  { %v2334_v15 = vmul.f32 %v4157_v16, %v2135_v51  ;;  %v3309_v14 = vpop.eup %3308  ;;  %3320 = verf.f32 %v1954_v62  ;;  %v2335_v37 = vmul.f32 %v4157_v16, %v2136_v25  ;;  %v2073_v30 = vadd.f32 1.0, %v3303_v11 }
 0x204   :  { %v2074_v34 = vadd.f32 1.0, %v3305_v38  ;;  %v1885_v9 = vmul.f32 0.5, %v4162_v31  ;;  %v1886_v17 = vmul.f32 0.5, %v4164_v59  ;;  %v1955_v24 = vmul.f32 0.70710677, %v4202_v1 }
 0x205   :  { %v2398_v36 = vadd.f32 %v2397_v55, %v2334_v15  ;;  %v2419_v26 = vadd.f32 %v2418_v8, %v2335_v37  ;;  %v1956_v45 = vmul.f32 0.70710677, %v4204_v2  ;;  %v2137_v61 = vmul.f32 %v2073_v30, %v1881_v13  ;;  %v2275_v39 = vpop.permute.xlu0 %2274 }
 0x206   :  { %v3311_v56 = vpop.eup %3310  ;;  %v2138_v42 = vmul.f32 %v2074_v34, %v1882_v6  ;;  %3322 = verf.f32 %v1955_v24  ;;  %v2075_v29 = vadd.f32 1.0, %v3307_v41  ;;  %v2076_v16 = vadd.f32 1.0, %v3309_v14 }
 0x207   :  { %v3313_v10 = vpop.eup %3312  ;;  %v2077_v35 = vadd.f32 1.0, %v3311_v56  ;;  %3324 = verf.f32 %v1956_v45  ;;  %v2336_v32 = vmul.f32 %v4174_v7, %v2137_v61  ;;  %v1887_v21 = vmul.f32 0.5, %v4177_v19 }
 0x208   :  { %v2337_v31 = vmul.f32 %v4174_v7, %v2138_v42  ;;  %v2078_v59 = vadd.f32 1.0, %v3313_v10  ;;  %v2139_v63 = vmul.f32 %v2075_v29, %v1883_v58  ;;  %v2140_v0 = vmul.f32 %v2076_v16, %v1884_v44 }
 0x209   :  { %v2141_v4 = vmul.f32 %v2077_v35, %v1885_v9  ;;  %v2399_v5 = vadd.f32 %v2398_v36, %v2336_v32  ;;  %v1888_v11 = vmul.f32 0.5, %v4179_v23  ;;  %v2279_v51 = vpop.permute.xlu0 %2278  ;;  %v1889_v8 = vmul.f32 0.5, %v4190_v48 }
 0x20a   :  { %v3315_v57 = vpop.eup %3314  ;;  %v2420_v13 = vadd.f32 %v2419_v26, %v2337_v31  ;;  %v2142_v6 = vmul.f32 %v2078_v59, %v1886_v17  ;;  %v2338_v49 = vmul.f32 %v2267_v52, %v2139_v63  ;;  %v2339_v18 = vmul.f32 %v2267_v52, %v2140_v0 }
 0x20b   :  { %v3317_v40 = vpop.eup %3316  ;;  %v2340_v43 = vmul.f32 %v2271_v60, %v2141_v4  ;;  %v2079_v27 = vadd.f32 1.0, %v3315_v57  ;;  %v1890_v25 = vmul.f32 0.5, %v4193_v3  ;;  %v1891_v30 = vmul.f32 0.5, %v4202_v1 }
 0x20c   :  { %v2341_v47 = vmul.f32 %v2271_v60, %v2142_v6  ;;  %v2080_v7 = vadd.f32 1.0, %v3317_v40  ;;  %v2400_v46 = vadd.f32 %v2399_v5, %v2338_v49  ;;  %v2421_v28 = vadd.f32 %v2420_v13, %v2339_v18 }
 0x20d   :  { %v2143_v54 = vmul.f32 %v2079_v27, %v1887_v21  ;;  %v1892_v9 = vmul.f32 0.5, %v4204_v2  ;;  %v2283_v36 = vpop.permute.xlu0 %2282  ;;  %v3444_v59 = vmov 1983009808   ;;  %v3445_v27 = vmov 269488144  }
 0x20e   :  { %v2144_v50 = vmul.f32 %v2080_v7, %v1888_v11  ;;  %v2401_v38 = vadd.f32 %v2400_v46, %v2340_v43  ;;  %v2422_v58 = vadd.f32 %v2421_v28, %v2341_v47  ;;  %v2438_v63 = vunpack.c.l.s4 %v3444_v59  ;;  %v2149_v46 = vld [vmem:[#allocation2] sm:$0xf] }
 0x20f   :  { %v2342_v19 = vmul.f32 %v2275_v39, %v2143_v54  ;;  %v3319_v55 = vpop.eup %3318  ;;  %v2488_v11 = vunpack.c.l.s4 %v3445_v27 }
 0x210   :  { %v2343_v33 = vmul.f32 %v2275_v39, %v2144_v50  ;;  %v3321_v44 = vpop.eup %3320  ;;  %v2081_v62 = vadd.f32 1.0, %v3319_v55  ;;  %v2439_v21 = vunpack.c.0.s8 %v2438_v63  ;;  %v4301_v39 = vld [vmem:[#allocation17_spill] sm:$0xff] }
 0x211   :  { %v2402_v52 = vadd.f32 %v2401_v38, %v2342_v19  ;;  %v2082_v20 = vadd.f32 1.0, %v3321_v44  ;;  %v2489_v54 = vunpack.c.0.s8 %v2488_v11  ;;  %v2486_v19 = vpop.permute.xlu0 %2485  ;;  %v2826_v44 = vld [vmem:[%s4235_s5] ss:$0 sm:$0xff] }
 0x212   :  { %v2423_v23 = vadd.f32 %v2422_v58, %v2343_v33  ;;  %v2145_v41 = vmul.f32 %v2081_v62, %v1889_v8  ;;  %v2442_v40 = vsub.s32 %v2439_v21, %v4301_v39 }
 0x213   :  { %v3323_v15 = vpop.eup %3322  ;;  %v2146_v14 = vmul.f32 %v2082_v20, %v1890_v25  ;;  %v2492_v58 = vsub.s32 %v2489_v54, %v4301_v39 }
 0x214   :  { %v3325_v37 = vpop.eup %3324  ;;  %v2344_v34 = vmul.f32 %v2279_v51, %v2145_v41  ;;  %v2083_v60 = vadd.f32 1.0, %v3323_v15  ;;  %v2443_v18 = vrot.slane %v2436_v53, %v2442_v40 }
 0x215   :  { %v2345_v17 = vmul.f32 %v2279_v51, %v2146_v14  ;;  %v2084_v24 = vadd.f32 1.0, %v3325_v37  ;;  %v2493_v55 = vrot.slane %v2486_v19, %v2492_v58 }
 0x216   :  { %v2403_v48 = vadd.f32 %v2402_v52, %v2344_v34  ;;  %v2147_v56 = vmul.f32 %v2083_v60, %v1891_v30 }
 0x217   :  { %v2424_v26 = vadd.f32 %v2423_v23, %v2345_v17  ;;  %v2148_v45 = vmul.f32 %v2084_v24, %v1892_v9 }
 0x218   :  { %v2346_v3 = vmul.f32 %v2283_v36, %v2147_v56 }
 0x219   :  { %v2347_v61 = vmul.f32 %v2283_v36, %v2148_v45 }
 0x21a   :  { %v2404_v42 = vadd.f32 %v2403_v48, %v2346_v3 }
 0x21b   :  { %v2425_v10 = vadd.f32 %v2424_v26, %v2347_v61 }
 0x21c   :  { %v2405_v29 = vrot.slane %v2404_v42, 4 }
 0x21d   :  { %v2426_v16 = vrot.slane %v2425_v10, 4 }
 0x21e   :  { %v2406_v35 = vadd.f32 %v2405_v29, %v2404_v42 }
 0x21f   :  { %v2427_v32 = vadd.f32 %v2426_v16, %v2425_v10 }
 0x220   :  { %v2407_v1 = vrot.slane %v2406_v35, 2 }
 0x221   :  { %v2428_v31 = vrot.slane %v2427_v32, 2 }
 0x222   :  { %v2408_v2 = vadd.f32 %v2407_v1, %v2406_v35 }
 0x223   :  { %v2429_v0 = vadd.f32 %v2428_v31, %v2427_v32 }
 0x224   :  { %v2409_v4 = vrot.slane %v2408_v2, 1 }
 0x225   :  { %v2430_v57 = vrot.slane %v2429_v0, 1 }
 0x226   :  { %v2410_v5 = vadd.f32 %v2409_v4, %v2408_v2 }
 0x227   :  { %v2431_v13 = vadd.f32 %v2430_v57, %v2429_v0 }
 0x229   :  { %v2444_v6 = vcombine.low %v2410_v5, %v2431_v13 }
 0x22b   :  { %v2451_v49 = vrot.slane %v2444_v6, %v2442_v40 }
 0x22d   :  { %v2456_v43 = vrot.slane %v2451_v49, 7 }
 0x22f   :  { %v2458_v47 = vsel %vm2457_vm2, %v2456_v43, %v2443_v18 }
 0x230   :  { %v2460_v7 = vsel %vm2459_vm3, %v2456_v43, %v2458_v47 }
 0x231   :  { %v2462_v28 = vsel %vm2461_vm4, %v2456_v43, %v2460_v7 }
 0x232   :  { %v2464_v50 = vsel %vm2463_vm5, %v2456_v43, %v2462_v28 }
 0x233   :  { %v2466_v38 = vadd.f32 %v2464_v50, %v2149_v46 }
 0x235   :  { %2467 = vst [vmem:[#allocation2] sm:$0xf] %v2466_v38 }
 0x23c   :  { %v2481_v22 = vld [vmem:[#allocation2] sm:$0xf] }
 0x23d   :  { %v2495_v12 = vmul.f32 %v2493_v55, %v2481_v22 }
 0x23f   :  { %v2542_v53 = vrot.slane %v2495_v12, %v2442_v40 }
 0x241   :  { %v2543_v33 = vcombine.high %v2542_v53, %v2542_v53 }
 0x243   :  { %2610 = vmatprep.mubr.f32.mxu1 %v2543_v33 }
 0x244   :  { %2611 = vmatmul.mubr.f32.vlgmr.msra.gmra.mxu1 %v2542_v53 }
 0x304   :  { %v2859_v51 = vpop.f32.mrf.mxu1 }
 0x306   :  { %v2860_v8 = vpop.f32.mrf.mxu1 }
 0x307   :  { %v2861_v52 = vadd.f32 %v2860_v8, %v2859_v51 }
 0x309   :  { %v2613_v62 = vadd.f32 %v2861_v52, %v2826_v44 }
 0x30b   :  { %2616 = vst [vmem:[#allocation12] sm:$0x3] %v2613_v62 }
 0x30c   :  { %3417 = shalt.err (!%p3414_p10)
}
 0x30d   :  { %2626 = dma.vmem_to_hbm [thread:$0]  %s2624_s21, 32, %s4236_s6, [#allocation6]  }
 0x30e   :  { %3432 = dma.done.wait [#allocation6], 32  }
 0x30f   :  { %3433 = vsyncadd [#allocation6], 4294967264 }
 0x310   :  { %2630 = vsyncpa [#allocation5], 1 }
 0x311   :  { %2631 = vsyncpa [#allocation8], 1 }
 0x312   :  { %2632 = vsyncpa [#allocation11], 1 }
 0x313   :  { %2633 = vsyncpa [#allocation6], 1 }

</bundles_post_ra>
